<compile_context>
chip_gen: v7x
topology: tpu7x:2x2x1
jax: 0.10.0
libtpu: 0.0.40
codegen_flags: <defaults>
</compile_context>

<pallas_src>
import functools
import math

import jax
import jax.numpy as jnp
from jax import lax
from jax.experimental import pallas as pl
from jax.experimental.pallas import tpu as pltpu

EPS = 1e-5        # BatchNorm1d default eps
NEG_BIG = 1e30    # max-pool sentinel


def _round_up(v, m):
    return ((v + m - 1) // m) * m


# --------------------------------------------------------------------------- #
# BN statistics accumulator (masked Chan/Welford merge across graph tiles)
# --------------------------------------------------------------------------- #
def _accumulate_bn_stats(stats_ref, h, valid, step):
    """stats_ref: [8, H] output block, resident across the ('arbitrary') graph axis.
       row 0: valid-node count (replicated over H)
       row 1: masked sum
       row 2: masked centered sum-of-squares (M2)."""
    @pl.when(step == 0)
    def _():
        stats_ref[...] = jnp.zeros_like(stats_ref)

    hv = h * valid
    n_t = jnp.sum(valid)                                  # scalar
    s_t = jnp.sum(hv, axis=0, keepdims=True)              # [1, H]
    m_t = s_t / jnp.maximum(n_t, 1.0)
    d = (h - m_t) * valid
    q_t = jnp.sum(d * d, axis=0, keepdims=True)           # [1, H]

    n_old = stats_ref[0:1, :]
    s_old = stats_ref[1:2, :]
    m2_old = stats_ref[2:3, :]

    n_new = n_old + n_t
    m_old = s_old / jnp.maximum(n_old, 1.0)
    delta = m_t - m_old
    w = n_old * n_t / jnp.maximum(n_new, 1.0)
    m2_new = m2_old + q_t + delta * delta * w

    stats_ref[0:1, :] = n_new
    stats_ref[1:2, :] = s_old + s_t
    stats_ref[2:3, :] = m2_new


# --------------------------------------------------------------------------- #
# Kernels
# --------------------------------------------------------------------------- #
def conv1_kernel(x_ref, a_ref, valid_ref, wpack_ref, vpack_ref,
                 hpre_ref, stats_ref, *, gt, npg, cpad, hid):
    g = pl.program_id(0)
    rows = gt * npg
    x = x_ref[...].reshape(rows, cpad)                     # [R, Cp]
    A = a_ref[...]                                         # [Gt, Np, Np]
    v = valid_ref[...].reshape(rows, 1)                    # [R, 1]

    wp = wpack_ref[...]
    w_emb = wp[0:cpad, :]                                  # padded rows are zero
    w_rel = wp[cpad:cpad + hid, :]
    w_root = wp[cpad + hid:cpad + 2 * hid, :]
    b_emb = vpack_ref[0:1, :]
    b_rel = vpack_ref[1:2, :]

    # node embedding
    h0 = jnp.dot(x, w_emb, preferred_element_type=jnp.float32) + b_emb
    # GraphConv(aggr='add', edge_weight): per-graph block matmul on the MXU
    agg = jnp.einsum('gij,gjh->gih', A, h0.reshape(gt, npg, hid),
                     preferred_element_type=jnp.float32).reshape(rows, hid)
    # two dots accumulated in f32 (no lane-axis concat)
    h_pre = (jnp.dot(agg, w_rel, preferred_element_type=jnp.float32)
             + jnp.dot(h0, w_root, preferred_element_type=jnp.float32)
             + b_rel)

    hpre_ref[...] = h_pre.reshape(gt, npg, hid)
    _accumulate_bn_stats(stats_ref, h_pre, v, g)


def conv2_kernel(hin_ref, a_ref, valid_ref, wpack_ref, vpack_ref, aff_ref,
                 hpre_ref, stats_ref, *, gt, npg, cpad, hid):
    g = pl.program_id(0)
    rows = gt * npg
    h_in = hin_ref[...].reshape(rows, hid)
    A = a_ref[...]
    v = valid_ref[...].reshape(rows, 1)

    wp = wpack_ref[...]
    w_rel = wp[cpad + 2 * hid:cpad + 3 * hid, :]
    w_root = wp[cpad + 3 * hid:cpad + 4 * hid, :]
    b_rel = vpack_ref[2:3, :]
    scale = aff_ref[0:1, :]
    shift = aff_ref[1:2, :]

    # folded BatchNorm1 affine + ReLU
    h = jnp.maximum(h_in * scale + shift, 0.0)
    agg = jnp.einsum('gij,gjh->gih', A, h.reshape(gt, npg, hid),
                     preferred_element_type=jnp.float32).reshape(rows, hid)
    h_pre = (jnp.dot(agg, w_rel, preferred_element_type=jnp.float32)
             + jnp.dot(h, w_root, preferred_element_type=jnp.float32)
             + b_rel)

    hpre_ref[...] = h_pre.reshape(gt, npg, hid)
    _accumulate_bn_stats(stats_ref, h_pre, v, g)


def head_kernel(hin_ref, valid_ref, aff_ref, mlp1_ref, mlp2_ref, out_ref,
                *, gt, npg, hid):
    rows = gt * npg
    h_in = hin_ref[...].reshape(rows, hid)
    v3 = valid_ref[...]                                    # [Gt, Np, 1]
    v = v3.reshape(rows, 1)
    scale = aff_ref[0:1, :]
    shift = aff_ref[1:2, :]

    # folded BatchNorm2 affine + ReLU
    h = jnp.maximum(h_in * scale + shift, 0.0)

    # global_max_pool over nodes of each graph (padding rows masked out)
    masked = jnp.where(v > 0.0, h, -NEG_BIG)
    gx = jnp.max(masked.reshape(gt, npg, hid), axis=1)     # [Gt, H]
    cnt_g = jnp.sum(v3, axis=1)                            # [Gt, 1] valid nodes per graph
    gx = jnp.where(cnt_g > 0.0, gx, 0.0)                   # dummy graphs -> 0, not -1e30

    m1 = mlp1_ref[...]
    w_m1, b_m1 = m1[0:hid, :], m1[hid:hid + 1, :]
    m2 = mlp2_ref[...]
    w_m2, b_m2 = m2[0:2 * hid, :], m2[2 * hid:2 * hid + 1, :]

    z = jnp.maximum(jnp.dot(gx, w_m1, preferred_element_type=jnp.float32) + b_m1, 0.0)
    out_ref[...] = jnp.dot(z, w_m2, preferred_element_type=jnp.float32) + b_m2


# --------------------------------------------------------------------------- #
# Parameters / packing
# --------------------------------------------------------------------------- #
def make_params(key, in_channels, hid, num_classes):
    ks = jax.random.split(key, 20)
    it = iter(range(20))

    def lin_w(k, fan_in, fan_out):
        bound = 1.0 / math.sqrt(fan_in)
        return jax.random.uniform(k, (fan_in, fan_out), jnp.float32, -bound, bound)

    def lin_b(k, fan_in, fan_out):
        bound = 1.0 / math.sqrt(fan_in)
        return jax.random.uniform(k, (1, fan_out), jnp.float32, -bound, bound)

    p = {}
    p["w_emb"] = lin_w(ks[next(it)], in_channels, hid)
    p["b_emb"] = lin_b(ks[next(it)], in_channels, hid)
    for i in (1, 2):
        p[f"w_rel{i}"] = lin_w(ks[next(it)], hid, hid)
        p[f"b_rel{i}"] = lin_b(ks[next(it)], hid, hid)
        p[f"w_root{i}"] = lin_w(ks[next(it)], hid, hid)     # lin_root has no bias
        p[f"gamma{i}"] = jnp.ones((1, hid), jnp.float32)
        p[f"beta{i}"] = jnp.zeros((1, hid), jnp.float32)
    p["w_m1"] = lin_w(ks[next(it)], hid, 2 * hid)
    p["b_m1"] = lin_b(ks[next(it)], hid, 2 * hid)
    p["w_m2"] = lin_w(ks[next(it)], 2 * hid, num_classes)
    p["b_m2"] = lin_b(ks[next(it)], 2 * hid, num_classes)
    return p


def pack_params(params, in_channels, hid, num_classes, ncp):
    """Pack the small parameter tensors into 4 VMEM inputs (one DMA each)."""
    H, C = hid, in_channels
    Cp = _round_up(C, 8)
    w_emb_pad = jnp.zeros((Cp, H), jnp.float32).at[:C].set(params["w_emb"])
    wpack = jnp.concatenate([
        w_emb_pad, params["w_rel1"], params["w_root1"],
        params["w_rel2"], params["w_root2"]], axis=0)                       # [Cp+4H, H]
    vpack = jnp.concatenate([
        params["b_emb"], params["b_rel1"], params["b_rel2"],
        jnp.zeros((5, H), jnp.float32)], axis=0)                            # [8, H]
    mlp1 = jnp.concatenate([params["w_m1"], params["b_m1"],
                            jnp.zeros((7, 2 * H), jnp.float32)], axis=0)    # [H+8, 2H]
    w_m2 = jnp.zeros((2 * H, ncp), jnp.float32).at[:, :num_classes].set(params["w_m2"])
    b_m2 = jnp.zeros((1, ncp), jnp.float32).at[:, :num_classes].set(params["b_m2"])
    mlp2 = jnp.concatenate([w_m2, b_m2, jnp.zeros((7, ncp), jnp.float32)], axis=0)
    return wpack, vpack, mlp1, mlp2


def _bn_fold(stats, gamma, beta):
    """Fold training-mode BatchNorm1d (biased variance) into scale/shift ([8, H])."""
    n = jnp.maximum(stats[0:1, :], 1.0)
    mu = stats[1:2, :] / n
    var = stats[2:3, :] / n
    scale = gamma * lax.rsqrt(var + EPS)
    shift = beta - mu * scale
    return jnp.concatenate(
        [scale, shift, jnp.zeros((6, scale.shape[1]), jnp.float32)], axis=0)


# --------------------------------------------------------------------------- #
# Tiling / VMEM budgeting
# --------------------------------------------------------------------------- #
def _choose_graph_tile(num_graphs, npg, cpad, hid, budget_bytes=12 << 20):
    # double-buffered per-graph bytes of the tiled operands (A + x + valid + h in/out, f32)
    per_graph = 4 * npg * (npg + cpad + 1 + 2 * hid)
    gt = (budget_bytes // max(2 * per_graph, 1)) // 8 * 8
    gt = max(8, min(gt, _round_up(num_graphs, 8)))
    return int(gt)


def _vmem_limit_bytes(gt, npg, cpad, hid, ncp):
    tiled = 4 * gt * npg * (npg + cpad + 1 + 2 * hid)      # double-buffered blocks
    const = 4 * ((cpad + 4 * hid) * hid + 3 * 8 * hid
                 + (hid + 8) * 2 * hid + (2 * hid + 8) * ncp)
    interm = 4 * gt * npg * 4 * hid                        # in-kernel temporaries
    est = 2 * tiled + const + interm + (2 << 20)
    # keep below v7x's 64 MiB physical VMEM per TensorCore
    return int(min(max(2 * est, 32 << 20), 64 << 20))


# --------------------------------------------------------------------------- #
# Forward wrapper
# --------------------------------------------------------------------------- #
def mnist_sp_net_forward(x, edge_index, edge_attr, batch, params,
                         num_graphs, nodes_per_graph, num_classes, graph_tile=None):
    """x: [N, C] f32; edge_index: [2, E] i32 (row0=src, row1=dst); edge_attr: [E, 1] f32;
    batch: [N] i32 graph ids, nodes ordered by graph (standard PyG batching).
    nodes_per_graph is a static upper bound on nodes per graph.
    NOTE: nodes/edges whose within-graph index reaches nodes_per_graph would be silently
    dropped by the scatter (XLA OOB-drop), so nodes_per_graph must be a true bound."""
    N, C = x.shape
    G, Np = num_graphs, nodes_per_graph
    H = params["w_emb"].shape[1]
    Cp = _round_up(C, 8)
    ncp = _round_up(num_classes, 128)

    Gt = graph_tile if graph_tile is not None else _choose_graph_tile(G, Np, Cp, H)
    assert Gt % 8 == 0, "graph tile must be a multiple of 8"
    Gp = _round_up(max(G, Gt), Gt)
    n_tiles = Gp // Gt

    ew = edge_attr.reshape(-1).astype(jnp.float32)

    # --- host glue: scatter nodes / edges into per-graph blocks (plain JAX) ---
    # TODO(synk): cache A_blk/x_blk/valid across forward calls on the same batch; the
    # dense scatter itself touches as many bytes as the conv kernels read.
    counts = jnp.zeros((G,), jnp.int32).at[batch].add(1)
    offsets = jnp.concatenate([jnp.zeros((1,), jnp.int32), jnp.cumsum(counts)[:-1]])
    pos = jnp.arange(N, dtype=jnp.int32) - offsets[batch]     # index within own graph

    x_pad = jnp.zeros((N, Cp), jnp.float32).at[:, :C].set(x.astype(jnp.float32))
    x_blk = jnp.zeros((Gp, Np, Cp), jnp.float32).at[batch, pos].set(x_pad)
    valid = jnp.zeros((Gp, Np, 1), jnp.float32).at[batch, pos].set(1.0)
    src, dst = edge_index[0], edge_index[1]
    # block-diagonal adjacency: A[g, i, j] = sum of weights of edges j -> i in graph g
    A_blk = jnp.zeros((Gp, Np, Np), jnp.float32).at[batch[dst], pos[dst], pos[src]].add(ew)

    wpack, vpack, mlp1, mlp2 = pack_params(params, C, H, num_classes, ncp)

    node_spec = lambda d: pl.BlockSpec((Gt, Np, d), lambda g: (g, 0, 0))
    const_spec = lambda shape: pl.BlockSpec(shape, lambda g: (0, 0))
    stats_spec = pl.BlockSpec((8, H), lambda g: (0, 0))       # resident accumulator

    vmem = _vmem_limit_bytes(Gt, Np, Cp, H, ncp)
    acc_cp = pltpu.CompilerParams(dimension_semantics=("arbitrary",),
                                  vmem_limit_bytes=vmem)
    par_cp = pltpu.CompilerParams(dimension_semantics=("parallel",),
                                  vmem_limit_bytes=vmem)

    # --- call 1: node_emb + GraphConv1 (pre-BN) + BN1 stats -------------------
    h1_pre, stats1 = pl.pallas_call(
        functools.partial(conv1_kernel, gt=Gt, npg=Np, cpad=Cp, hid=H),
        grid=(n_tiles,),
        in_specs=[node_spec(Cp), node_spec(Np), node_spec(1),
                  const_spec((Cp + 4 * H, H)), const_spec((8, H))],
        out_specs=(node_spec(H), stats_spec),
        out_shape=(jax.ShapeDtypeStruct((Gp, Np, H), jnp.float32),
                   jax.ShapeDtypeStruct((8, H), jnp.float32)),
        compiler_params=acc_cp,
    )(x_blk, A_blk, valid, wpack, vpack)

    aff1 = _bn_fold(stats1, params["gamma1"], params["beta1"])   # tiny [1,H] finalize

    # --- call 2: BN1+ReLU + GraphConv2 (pre-BN) + BN2 stats -------------------
    h2_pre, stats2 = pl.pallas_call(
        functools.partial(conv2_kernel, gt=Gt, npg=Np, cpad=Cp, hid=H),
        grid=(n_tiles,),
        in_specs=[node_spec(H), node_spec(Np), node_spec(1),
                  const_spec((Cp + 4 * H, H)), const_spec((8, H)), const_spec((8, H))],
        out_specs=(node_spec(H), stats_spec),
        out_shape=(jax.ShapeDtypeStruct((Gp, Np, H), jnp.float32),
                   jax.ShapeDtypeStruct((8, H), jnp.float32)),
        compiler_params=acc_cp,
    )(h1_pre, A_blk, valid, wpack, vpack, aff1)

    aff2 = _bn_fold(stats2, params["gamma2"], params["beta2"])

    # --- call 3: BN2+ReLU + global_max_pool + causal_mlp ----------------------
    out_pad = pl.pallas_call(
        functools.partial(head_kernel, gt=Gt, npg=Np, hid=H),
        grid=(n_tiles,),
        in_specs=[node_spec(H), node_spec(1), const_spec((8, H)),
                  const_spec((H + 8, 2 * H)), const_spec((2 * H + 8, ncp))],
        out_specs=pl.BlockSpec((Gt, ncp), lambda g: (g, 0)),
        out_shape=jax.ShapeDtypeStruct((Gp, ncp), jnp.float32),
        compiler_params=par_cp,
    )(h2_pre, valid, aff2, mlp1, mlp2)

    return out_pad[:G, :num_classes]


# --------------------------------------------------------------------------- #
# Pure-JAX reference (identical semantics, for validation)
# --------------------------------------------------------------------------- #
def reference_forward(x, edge_index, edge_attr, batch, params, num_graphs):
    w = edge_attr.reshape(-1).astype(jnp.float32)
    N = x.shape[0]
    A = jnp.zeros((N, N), jnp.float32).at[edge_index[1], edge_index[0]].add(w)
    h = x @ params["w_emb"] + params["b_emb"]
    for i in (1, 2):
        agg = A @ h
        h = agg @ params[f"w_rel{i}"] + params[f"b_rel{i}"] + h @ params[f"w_root{i}"]
        mu = h.mean(0, keepdims=True)
        var = ((h - mu) ** 2).mean(0, keepdims=True)
        h = params[f"gamma{i}"] * (h - mu) / jnp.sqrt(var + EPS) + params[f"beta{i}"]
        h = jnp.maximum(h, 0.0)
    neg = jnp.float32(-NEG_BIG)
    gx = jnp.stack([
        jnp.max(jnp.where((batch == g)[:, None], h, neg), axis=0)
        for g in range(num_graphs)
    ])
    z = jnp.maximum(gx @ params["w_m1"] + params["b_m1"], 0.0)
    return z @ params["w_m2"] + params["b_m2"]


if __name__ == "__main__":
    in_channels, hid, num_classes = 4, 32, 10
    N, E, G = 16, 40, 2
    Np = N // G

    key = jax.random.PRNGKey(0)
    kx, ke, kw, _ = jax.random.split(key, 4)

    x = jax.random.normal(kx, (N, in_channels), jnp.float32)
    # graph 0 = nodes 0..7, graph 1 = nodes 8..15; edges stay within a graph
    batch = jnp.concatenate([jnp.zeros(N // 2, jnp.int32), jnp.ones(N // 2, jnp.int32)])
    src = jax.random.randint(ke, (E,), 0, N // 2, jnp.int32)
    dst = jax.random.randint(jax.random.fold_in(ke, 1), (E,), 0, N // 2, jnp.int32)
    offs = jnp.where(jnp.arange(E) < E // 2, 0, N // 2).astype(jnp.int32)
    edge_index = jnp.stack([src + offs, dst + offs], axis=0)
    edge_attr = jax.random.uniform(kw, (E, 1), jnp.float32, 0.1, 1.0)

    params = make_params(jax.random.PRNGKey(42), in_channels, hid, num_classes)

    fwd = jax.jit(functools.partial(
        mnist_sp_net_forward,
        num_graphs=G, nodes_per_graph=Np, num_classes=num_classes))
    out = jax.block_until_ready(fwd(x, edge_index, edge_attr, batch, params))

    ref = reference_forward(x, edge_index, edge_attr, batch, params, G)
    assert out.shape == (G, num_classes)
    assert jnp.allclose(out, ref, rtol=1e-4, atol=1e-4), (out, ref)
    print("KERNEL_OK")
</pallas_src>

<mosaic_0001>
module attributes {stable_mosaic.version = 11 : i64} {
  func.func private @main(%arg0: i32) attributes {dimension_semantics = [#tpu.dimension_semantics<core_parallel>], iteration_bounds = array<i64: 2>, tpu.core_type = #tpu.core_type<sc_scalar_subcore>, window_params = []} {
    return
  }
}

module attributes {stable_mosaic.version = 11 : i64} {
  func.func private @main(%arg0: i32) attributes {dimension_semantics = [#tpu.dimension_semantics<core_parallel>], iteration_bounds = array<i64: 2>, tpu.core_type = #tpu.core_type<sc_scalar_subcore>, window_params = []} {
    return
  }
}

module attributes {stable_mosaic.version = 11 : i64} {
  func.func @conv1_kernel(%arg0: i32, %arg1: memref<8x8x8xf32, #tpu.memory_space<vmem>>, %arg2: memref<8x8x8xf32, #tpu.memory_space<vmem>>, %arg3: memref<8x8x1xf32, #tpu.memory_space<vmem>>, %arg4: memref<136x32xf32, #tpu.memory_space<vmem>>, %arg5: memref<8x32xf32, #tpu.memory_space<vmem>>, %arg6: memref<8x8x32xf32, #tpu.memory_space<vmem>>, %arg7: memref<8x32xf32, #tpu.memory_space<vmem>>) attributes {dimension_semantics = [#tpu.dimension_semantics<arbitrary>], iteration_bounds = array<i64: 1>, scalar_prefetch = 0 : i64, scratch_operands = 0 : i64, tpu.core_type = #tpu.core_type<tc>, window_params = [{transform_indices = @transform_0, window_bounds = array<i64: 8, 8, 8>}, {transform_indices = @transform_1, window_bounds = array<i64: 8, 8, 8>}, {transform_indices = @transform_2, window_bounds = array<i64: 8, 8, 1>}, {pipeline_mode = #tpu.pipeline_mode<synchronous>, transform_indices = @transform_3, window_bounds = array<i64: 136, 32>}, {pipeline_mode = #tpu.pipeline_mode<synchronous>, transform_indices = @transform_4, window_bounds = array<i64: 8, 32>}, {transform_indices = @transform_5, window_bounds = array<i64: 8, 8, 32>}, {pipeline_mode = #tpu.pipeline_mode<synchronous>, transform_indices = @transform_6, window_bounds = array<i64: 8, 32>}]} {
    %c0 = arith.constant 0 : index
    %c0_0 = arith.constant 0 : index
    %c0_1 = arith.constant 0 : index
    %0 = vector.load %arg1[%c0, %c0_0, %c0_1] : memref<8x8x8xf32, #tpu.memory_space<vmem>>, vector<8x8x8xf32>
    %1 = vector.shape_cast %0 : vector<8x8x8xf32> to vector<64x8xf32>
    %c0_2 = arith.constant 0 : index
    %c0_3 = arith.constant 0 : index
    %c0_4 = arith.constant 0 : index
    %2 = vector.load %arg2[%c0_2, %c0_3, %c0_4] : memref<8x8x8xf32, #tpu.memory_space<vmem>>, vector<8x8x8xf32>
    %c0_5 = arith.constant 0 : index
    %c0_6 = arith.constant 0 : index
    %c0_7 = arith.constant 0 : index
    %3 = vector.load %arg3[%c0_5, %c0_6, %c0_7] : memref<8x8x1xf32, #tpu.memory_space<vmem>>, vector<8x8x1xf32>
    %4 = vector.shape_cast %3 : vector<8x8x1xf32> to vector<64x1xf32>
    %c0_8 = arith.constant 0 : index
    %c0_9 = arith.constant 0 : index
    %5 = vector.load %arg4[%c0_8, %c0_9] : memref<136x32xf32, #tpu.memory_space<vmem>>, vector<136x32xf32>
    %6 = vector.extract_strided_slice %5 {offsets = [0, 0], sizes = [8, 32], strides = [1, 1]} : vector<136x32xf32> to vector<8x32xf32>
    %7 = vector.extract_strided_slice %5 {offsets = [8, 0], sizes = [32, 32], strides = [1, 1]} : vector<136x32xf32> to vector<32x32xf32>
    %8 = vector.extract_strided_slice %5 {offsets = [40, 0], sizes = [32, 32], strides = [1, 1]} : vector<136x32xf32> to vector<32x32xf32>
    %c0_10 = arith.constant 0 : index
    %c0_11 = arith.constant 0 : index
    %9 = vector.load %arg5[%c0_10, %c0_11] : memref<8x32xf32, #tpu.memory_space<vmem>>, vector<1x32xf32>
    %c1 = arith.constant 1 : index
    %c0_12 = arith.constant 0 : index
    %10 = vector.load %arg5[%c1, %c0_12] : memref<8x32xf32, #tpu.memory_space<vmem>>, vector<1x32xf32>
    %cst = arith.constant dense<0.000000e+00> : vector<64x32xf32>
    %11 = tpu.matmul %1, %6, %cst {dimension_numbers = #tpu.dot_dimension_numbers<[1], [0], [0], [1], [0, 0, 1, 1], [], []>} : vector<64x8xf32>, vector<8x32xf32>, vector<64x32xf32> -> vector<64x32xf32>
    %12 = vector.broadcast %9 : vector<1x32xf32> to vector<64x32xf32>
    %13 = arith.addf %11, %12 : vector<64x32xf32>
    %14 = vector.shape_cast %13 : vector<64x32xf32> to vector<8x8x32xf32>
    "tpu.trace_start"() <{level = 10 : i32, message = "gij,gjh->gih"}> : () -> ()
    %cst_13 = arith.constant dense<0.000000e+00> : vector<8x8x32xf32>
    %15 = tpu.matmul %2, %14, %cst_13 {dimension_numbers = #tpu.dot_dimension_numbers<[2], [1], [1], [2], [0, 0, 0, 1, 1, 2], [0], [0]>} : vector<8x8x8xf32>, vector<8x8x32xf32>, vector<8x8x32xf32> -> vector<8x8x32xf32>
    "tpu.trace_stop"() : () -> ()
    %16 = vector.shape_cast %15 : vector<8x8x32xf32> to vector<64x32xf32>
    %cst_14 = arith.constant dense<0.000000e+00> : vector<64x32xf32>
    %17 = tpu.matmul %16, %7, %cst_14 {dimension_numbers = #tpu.dot_dimension_numbers<[1], [0], [0], [1], [0, 0, 1, 1], [], []>} : vector<64x32xf32>, vector<32x32xf32>, vector<64x32xf32> -> vector<64x32xf32>
    %cst_15 = arith.constant dense<0.000000e+00> : vector<64x32xf32>
    %18 = tpu.matmul %13, %8, %cst_15 {dimension_numbers = #tpu.dot_dimension_numbers<[1], [0], [0], [1], [0, 0, 1, 1], [], []>} : vector<64x32xf32>, vector<32x32xf32>, vector<64x32xf32> -> vector<64x32xf32>
    %19 = arith.addf %17, %18 : vector<64x32xf32>
    %20 = vector.broadcast %10 : vector<1x32xf32> to vector<64x32xf32>
    %21 = arith.addf %19, %20 : vector<64x32xf32>
    %22 = vector.shape_cast %21 : vector<64x32xf32> to vector<8x8x32xf32>
    %c0_16 = arith.constant 0 : index
    %c0_17 = arith.constant 0 : index
    %c0_18 = arith.constant 0 : index
    %23 = vector.load %arg6[%c0_16, %c0_17, %c0_18] : memref<8x8x32xf32, #tpu.memory_space<vmem>>, vector<8x8x32xf32>
    tpu.vector_store %arg6[%c0_16, %c0_17, %c0_18], %22 {strides = array<i32>} : memref<8x8x32xf32, #tpu.memory_space<vmem>>, vector<8x8x32xf32>,
    %c0_i32 = arith.constant 0 : i32
    %24 = arith.cmpi eq, %arg0, %c0_i32 : i32
    %25 = arith.extui %24 : i1 to i32
    %c0_i32_19 = arith.constant 0 : i32
    %26 = arith.cmpi ne, %25, %c0_i32_19 : i32
    scf.if %26 {
      %cst_37 = arith.constant 0.000000e+00 : f32
      %67 = vector.broadcast %cst_37 : f32 to vector<8x32xf32>
      %c0_38 = arith.constant 0 : index
      %c0_39 = arith.constant 0 : index
      %68 = vector.load %arg7[%c0_38, %c0_39] : memref<8x32xf32, #tpu.memory_space<vmem>>, vector<8x32xf32>
      tpu.vector_store %arg7[%c0_38, %c0_39], %67 {strides = array<i32>} : memref<8x32xf32, #tpu.memory_space<vmem>>, vector<8x32xf32>,
    } else {
    }
    %27 = vector.broadcast %4 : vector<64x1xf32> to vector<64x32xf32>
    %28 = arith.mulf %21, %27 : vector<64x32xf32>
    %29 = vector.shape_cast %4 : vector<64x1xf32> to vector<1x64x1xf32>
    %cst_20 = arith.constant dense<0.000000e+00> : vector<1xf32>
    %30 = vector.multi_reduction <add>, %29, %cst_20 [1, 2] : vector<1x64x1xf32> to vector<1xf32>
    %31 = vector.shape_cast %30 : vector<1xf32> to vector<1x1x1xf32>
    %32 = vector.extract %31[0, 0, 0] : f32 from vector<1x1x1xf32>
    %cst_21 = arith.constant dense<0.000000e+00> : vector<32xf32>
    %33 = vector.multi_reduction <add>, %28, %cst_21 [0] : vector<64x32xf32> to vector<32xf32>
    %34 = vector.shape_cast %33 : vector<32xf32> to vector<1x32xf32>
    %cst_22 = arith.constant 1.000000e+00 : f32
    %35 = arith.maximumf %32, %cst_22 : f32
    %36 = vector.broadcast %35 : f32 to vector<1x32xf32>
    %37 = arith.divf %34, %36 : vector<1x32xf32>
    %38 = vector.broadcast %37 : vector<1x32xf32> to vector<64x32xf32>
    %39 = arith.subf %21, %38 : vector<64x32xf32>
    %40 = vector.broadcast %4 : vector<64x1xf32> to vector<64x32xf32>
    %41 = arith.mulf %39, %40 : vector<64x32xf32>
    %42 = arith.mulf %41, %41 : vector<64x32xf32>
    %cst_23 = arith.constant dense<0.000000e+00> : vector<32xf32>
    %43 = vector.multi_reduction <add>, %42, %cst_23 [0] : vector<64x32xf32> to vector<32xf32>
    %44 = vector.shape_cast %43 : vector<32xf32> to vector<1x32xf32>
    %c0_24 = arith.constant 0 : index
    %c0_25 = arith.constant 0 : index
    %45 = vector.load %arg7[%c0_24, %c0_25] : memref<8x32xf32, #tpu.memory_space<vmem>>, vector<1x32xf32>
    %c1_26 = arith.constant 1 : index
    %c0_27 = arith.constant 0 : index
    %46 = vector.load %arg7[%c1_26, %c0_27] : memref<8x32xf32, #tpu.memory_space<vmem>>, vector<1x32xf32>
    %c2 = arith.constant 2 : index
    %c0_28 = arith.constant 0 : index
    %47 = vector.load %arg7[%c2, %c0_28] : memref<8x32xf32, #tpu.memory_space<vmem>>, vector<1x32xf32>
    %48 = vector.broadcast %32 : f32 to vector<1x32xf32>
    %49 = arith.addf %45, %48 : vector<1x32xf32>
    %cst_29 = arith.constant 1.000000e+00 : f32
    %50 = vector.broadcast %cst_29 : f32 to vector<1x32xf32>
    %51 = arith.maximumf %45, %50 : vector<1x32xf32>
    %52 = arith.divf %46, %51 : vector<1x32xf32>
    %53 = arith.subf %37, %52 : vector<1x32xf32>
    %54 = vector.broadcast %32 : f32 to vector<1x32xf32>
    %55 = arith.mulf %45, %54 : vector<1x32xf32>
    %cst_30 = arith.constant 1.000000e+00 : f32
    %56 = vector.broadcast %cst_30 : f32 to vector<1x32xf32>
    %57 = arith.maximumf %49, %56 : vector<1x32xf32>
    %58 = arith.divf %55, %57 : vector<1x32xf32>
    %59 = arith.addf %47, %44 : vector<1x32xf32>
    %60 = arith.mulf %53, %53 : vector<1x32xf32>
    %61 = arith.mulf %60, %58 : vector<1x32xf32>
    %62 = arith.addf %59, %61 : vector<1x32xf32>
    %c0_31 = arith.constant 0 : index
    %c0_32 = arith.constant 0 : index
    %63 = vector.load %arg7[%c0_31, %c0_32] : memref<8x32xf32, #tpu.memory_space<vmem>>, vector<1x32xf32>
    tpu.vector_store %arg7[%c0_31, %c0_32], %49 {strides = array<i32>} : memref<8x32xf32, #tpu.memory_space<vmem>>, vector<1x32xf32>,
    %64 = arith.addf %46, %34 : vector<1x32xf32>
    %c1_33 = arith.constant 1 : index
    %c0_34 = arith.constant 0 : index
    %65 = vector.load %arg7[%c1_33, %c0_34] : memref<8x32xf32, #tpu.memory_space<vmem>>, vector<1x32xf32>
    tpu.vector_store %arg7[%c1_33, %c0_34], %64 {strides = array<i32>} : memref<8x32xf32, #tpu.memory_space<vmem>>, vector<1x32xf32>,
    %c2_35 = arith.constant 2 : index
    %c0_36 = arith.constant 0 : index
    %66 = vector.load %arg7[%c2_35, %c0_36] : memref<8x32xf32, #tpu.memory_space<vmem>>, vector<1x32xf32>
    tpu.vector_store %arg7[%c2_35, %c0_36], %62 {strides = array<i32>} : memref<8x32xf32, #tpu.memory_space<vmem>>, vector<1x32xf32>,
    return
  }
  func.func @transform_0(%arg0: i32) -> (i32, i32, i32) {
    %c0_i32 = arith.constant 0 : i32
    %c0_i32_0 = arith.constant 0 : i32
    %c0_i32_1 = arith.constant 0 : i32
    return %arg0, %c0_i32, %c0_i32_0 : i32, i32, i32
  }
  func.func @transform_1(%arg0: i32) -> (i32, i32, i32) {
    %c0_i32 = arith.constant 0 : i32
    %c0_i32_0 = arith.constant 0 : i32
    %c0_i32_1 = arith.constant 0 : i32
    return %arg0, %c0_i32, %c0_i32_0 : i32, i32, i32
  }
  func.func @transform_2(%arg0: i32) -> (i32, i32, i32) {
    %c0_i32 = arith.constant 0 : i32
    %c0_i32_0 = arith.constant 0 : i32
    %c0_i32_1 = arith.constant 0 : i32
    return %arg0, %c0_i32, %c0_i32_0 : i32, i32, i32
  }
  func.func @transform_3(%arg0: i32) -> (i32, i32) {
    %c0_i32 = arith.constant 0 : i32
    %c0_i32_0 = arith.constant 0 : i32
    %c0_i32_1 = arith.constant 0 : i32
    return %c0_i32, %c0_i32_0 : i32, i32
  }
  func.func @transform_4(%arg0: i32) -> (i32, i32) {
    %c0_i32 = arith.constant 0 : i32
    %c0_i32_0 = arith.constant 0 : i32
    %c0_i32_1 = arith.constant 0 : i32
    return %c0_i32, %c0_i32_0 : i32, i32
  }
  func.func @transform_5(%arg0: i32) -> (i32, i32, i32) {
    %c0_i32 = arith.constant 0 : i32
    %c0_i32_0 = arith.constant 0 : i32
    %c0_i32_1 = arith.constant 0 : i32
    return %arg0, %c0_i32, %c0_i32_0 : i32, i32, i32
  }
  func.func @transform_6(%arg0: i32) -> (i32, i32) {
    %c0_i32 = arith.constant 0 : i32
    %c0_i32_0 = arith.constant 0 : i32
    %c0_i32_1 = arith.constant 0 : i32
    return %c0_i32, %c0_i32_0 : i32, i32
  }
}

module attributes {stable_mosaic.version = 11 : i64} {
  func.func @conv2_kernel(%arg0: i32, %arg1: memref<8x8x32xf32, #tpu.memory_space<vmem>>, %arg2: memref<8x8x8xf32, #tpu.memory_space<vmem>>, %arg3: memref<8x8x1xf32, #tpu.memory_space<vmem>>, %arg4: memref<136x32xf32, #tpu.memory_space<vmem>>, %arg5: memref<8x32xf32, #tpu.memory_space<vmem>>, %arg6: memref<8x32xf32, #tpu.memory_space<vmem>>, %arg7: memref<8x8x32xf32, #tpu.memory_space<vmem>>, %arg8: memref<8x32xf32, #tpu.memory_space<vmem>>) attributes {dimension_semantics = [#tpu.dimension_semantics<arbitrary>], iteration_bounds = array<i64: 1>, scalar_prefetch = 0 : i64, scratch_operands = 0 : i64, tpu.core_type = #tpu.core_type<tc>, window_params = [{transform_indices = @transform_0, window_bounds = array<i64: 8, 8, 32>}, {transform_indices = @transform_1, window_bounds = array<i64: 8, 8, 8>}, {transform_indices = @transform_2, window_bounds = array<i64: 8, 8, 1>}, {pipeline_mode = #tpu.pipeline_mode<synchronous>, transform_indices = @transform_3, window_bounds = array<i64: 136, 32>}, {pipeline_mode = #tpu.pipeline_mode<synchronous>, transform_indices = @transform_4, window_bounds = array<i64: 8, 32>}, {pipeline_mode = #tpu.pipeline_mode<synchronous>, transform_indices = @transform_5, window_bounds = array<i64: 8, 32>}, {transform_indices = @transform_6, window_bounds = array<i64: 8, 8, 32>}, {pipeline_mode = #tpu.pipeline_mode<synchronous>, transform_indices = @transform_7, window_bounds = array<i64: 8, 32>}]} {
    %c0 = arith.constant 0 : index
    %c0_0 = arith.constant 0 : index
    %c0_1 = arith.constant 0 : index
    %0 = vector.load %arg1[%c0, %c0_0, %c0_1] : memref<8x8x32xf32, #tpu.memory_space<vmem>>, vector<8x8x32xf32>
    %1 = vector.shape_cast %0 : vector<8x8x32xf32> to vector<64x32xf32>
    %c0_2 = arith.constant 0 : index
    %c0_3 = arith.constant 0 : index
    %c0_4 = arith.constant 0 : index
    %2 = vector.load %arg2[%c0_2, %c0_3, %c0_4] : memref<8x8x8xf32, #tpu.memory_space<vmem>>, vector<8x8x8xf32>
    %c0_5 = arith.constant 0 : index
    %c0_6 = arith.constant 0 : index
    %c0_7 = arith.constant 0 : index
    %3 = vector.load %arg3[%c0_5, %c0_6, %c0_7] : memref<8x8x1xf32, #tpu.memory_space<vmem>>, vector<8x8x1xf32>
    %4 = vector.shape_cast %3 : vector<8x8x1xf32> to vector<64x1xf32>
    %c0_8 = arith.constant 0 : index
    %c0_9 = arith.constant 0 : index
    %5 = vector.load %arg4[%c0_8, %c0_9] : memref<136x32xf32, #tpu.memory_space<vmem>>, vector<136x32xf32>
    %6 = vector.extract_strided_slice %5 {offsets = [72, 0], sizes = [32, 32], strides = [1, 1]} : vector<136x32xf32> to vector<32x32xf32>
    %7 = vector.extract_strided_slice %5 {offsets = [104, 0], sizes = [32, 32], strides = [1, 1]} : vector<136x32xf32> to vector<32x32xf32>
    %c2 = arith.constant 2 : index
    %c0_10 = arith.constant 0 : index
    %8 = vector.load %arg5[%c2, %c0_10] : memref<8x32xf32, #tpu.memory_space<vmem>>, vector<1x32xf32>
    %c0_11 = arith.constant 0 : index
    %c0_12 = arith.constant 0 : index
    %9 = vector.load %arg6[%c0_11, %c0_12] : memref<8x32xf32, #tpu.memory_space<vmem>>, vector<1x32xf32>
    %c1 = arith.constant 1 : index
    %c0_13 = arith.constant 0 : index
    %10 = vector.load %arg6[%c1, %c0_13] : memref<8x32xf32, #tpu.memory_space<vmem>>, vector<1x32xf32>
    %11 = vector.broadcast %9 : vector<1x32xf32> to vector<64x32xf32>
    %12 = arith.mulf %1, %11 : vector<64x32xf32>
    %13 = vector.broadcast %10 : vector<1x32xf32> to vector<64x32xf32>
    %14 = arith.addf %12, %13 : vector<64x32xf32>
    %cst = arith.constant 0.000000e+00 : f32
    %15 = vector.broadcast %cst : f32 to vector<64x32xf32>
    %16 = arith.maximumf %14, %15 : vector<64x32xf32>
    %17 = vector.shape_cast %16 : vector<64x32xf32> to vector<8x8x32xf32>
    "tpu.trace_start"() <{level = 10 : i32, message = "gij,gjh->gih"}> : () -> ()
    %cst_14 = arith.constant dense<0.000000e+00> : vector<8x8x32xf32>
    %18 = tpu.matmul %2, %17, %cst_14 {dimension_numbers = #tpu.dot_dimension_numbers<[2], [1], [1], [2], [0, 0, 0, 1, 1, 2], [0], [0]>} : vector<8x8x8xf32>, vector<8x8x32xf32>, vector<8x8x32xf32> -> vector<8x8x32xf32>
    "tpu.trace_stop"() : () -> ()
    %19 = vector.shape_cast %18 : vector<8x8x32xf32> to vector<64x32xf32>
    %cst_15 = arith.constant dense<0.000000e+00> : vector<64x32xf32>
    %20 = tpu.matmul %19, %6, %cst_15 {dimension_numbers = #tpu.dot_dimension_numbers<[1], [0], [0], [1], [0, 0, 1, 1], [], []>} : vector<64x32xf32>, vector<32x32xf32>, vector<64x32xf32> -> vector<64x32xf32>
    %cst_16 = arith.constant dense<0.000000e+00> : vector<64x32xf32>
    %21 = tpu.matmul %16, %7, %cst_16 {dimension_numbers = #tpu.dot_dimension_numbers<[1], [0], [0], [1], [0, 0, 1, 1], [], []>} : vector<64x32xf32>, vector<32x32xf32>, vector<64x32xf32> -> vector<64x32xf32>
    %22 = arith.addf %20, %21 : vector<64x32xf32>
    %23 = vector.broadcast %8 : vector<1x32xf32> to vector<64x32xf32>
    %24 = arith.addf %22, %23 : vector<64x32xf32>
    %25 = vector.shape_cast %24 : vector<64x32xf32> to vector<8x8x32xf32>
    %c0_17 = arith.constant 0 : index
    %c0_18 = arith.constant 0 : index
    %c0_19 = arith.constant 0 : index
    %26 = vector.load %arg7[%c0_17, %c0_18, %c0_19] : memref<8x8x32xf32, #tpu.memory_space<vmem>>, vector<8x8x32xf32>
    tpu.vector_store %arg7[%c0_17, %c0_18, %c0_19], %25 {strides = array<i32>} : memref<8x8x32xf32, #tpu.memory_space<vmem>>, vector<8x8x32xf32>,
    %c0_i32 = arith.constant 0 : i32
    %27 = arith.cmpi eq, %arg0, %c0_i32 : i32
    %28 = arith.extui %27 : i1 to i32
    %c0_i32_20 = arith.constant 0 : i32
    %29 = arith.cmpi ne, %28, %c0_i32_20 : i32
    scf.if %29 {
      %cst_39 = arith.constant 0.000000e+00 : f32
      %70 = vector.broadcast %cst_39 : f32 to vector<8x32xf32>
      %c0_40 = arith.constant 0 : index
      %c0_41 = arith.constant 0 : index
      %71 = vector.load %arg8[%c0_40, %c0_41] : memref<8x32xf32, #tpu.memory_space<vmem>>, vector<8x32xf32>
      tpu.vector_store %arg8[%c0_40, %c0_41], %70 {strides = array<i32>} : memref<8x32xf32, #tpu.memory_space<vmem>>, vector<8x32xf32>,
    } else {
    }
    %30 = vector.broadcast %4 : vector<64x1xf32> to vector<64x32xf32>
    %31 = arith.mulf %24, %30 : vector<64x32xf32>
    %32 = vector.shape_cast %4 : vector<64x1xf32> to vector<1x64x1xf32>
    %cst_21 = arith.constant dense<0.000000e+00> : vector<1xf32>
    %33 = vector.multi_reduction <add>, %32, %cst_21 [1, 2] : vector<1x64x1xf32> to vector<1xf32>
    %34 = vector.shape_cast %33 : vector<1xf32> to vector<1x1x1xf32>
    %35 = vector.extract %34[0, 0, 0] : f32 from vector<1x1x1xf32>
    %cst_22 = arith.constant dense<0.000000e+00> : vector<32xf32>
    %36 = vector.multi_reduction <add>, %31, %cst_22 [0] : vector<64x32xf32> to vector<32xf32>
    %37 = vector.shape_cast %36 : vector<32xf32> to vector<1x32xf32>
    %cst_23 = arith.constant 1.000000e+00 : f32
    %38 = arith.maximumf %35, %cst_23 : f32
    %39 = vector.broadcast %38 : f32 to vector<1x32xf32>
    %40 = arith.divf %37, %39 : vector<1x32xf32>
    %41 = vector.broadcast %40 : vector<1x32xf32> to vector<64x32xf32>
    %42 = arith.subf %24, %41 : vector<64x32xf32>
    %43 = vector.broadcast %4 : vector<64x1xf32> to vector<64x32xf32>
    %44 = arith.mulf %42, %43 : vector<64x32xf32>
    %45 = arith.mulf %44, %44 : vector<64x32xf32>
    %cst_24 = arith.constant dense<0.000000e+00> : vector<32xf32>
    %46 = vector.multi_reduction <add>, %45, %cst_24 [0] : vector<64x32xf32> to vector<32xf32>
    %47 = vector.shape_cast %46 : vector<32xf32> to vector<1x32xf32>
    %c0_25 = arith.constant 0 : index
    %c0_26 = arith.constant 0 : index
    %48 = vector.load %arg8[%c0_25, %c0_26] : memref<8x32xf32, #tpu.memory_space<vmem>>, vector<1x32xf32>
    %c1_27 = arith.constant 1 : index
    %c0_28 = arith.constant 0 : index
    %49 = vector.load %arg8[%c1_27, %c0_28] : memref<8x32xf32, #tpu.memory_space<vmem>>, vector<1x32xf32>
    %c2_29 = arith.constant 2 : index
    %c0_30 = arith.constant 0 : index
    %50 = vector.load %arg8[%c2_29, %c0_30] : memref<8x32xf32, #tpu.memory_space<vmem>>, vector<1x32xf32>
    %51 = vector.broadcast %35 : f32 to vector<1x32xf32>
    %52 = arith.addf %48, %51 : vector<1x32xf32>
    %cst_31 = arith.constant 1.000000e+00 : f32
    %53 = vector.broadcast %cst_31 : f32 to vector<1x32xf32>
    %54 = arith.maximumf %48, %53 : vector<1x32xf32>
    %55 = arith.divf %49, %54 : vector<1x32xf32>
    %56 = arith.subf %40, %55 : vector<1x32xf32>
    %57 = vector.broadcast %35 : f32 to vector<1x32xf32>
    %58 = arith.mulf %48, %57 : vector<1x32xf32>
    %cst_32 = arith.constant 1.000000e+00 : f32
    %59 = vector.broadcast %cst_32 : f32 to vector<1x32xf32>
    %60 = arith.maximumf %52, %59 : vector<1x32xf32>
    %61 = arith.divf %58, %60 : vector<1x32xf32>
    %62 = arith.addf %50, %47 : vector<1x32xf32>
    %63 = arith.mulf %56, %56 : vector<1x32xf32>
    %64 = arith.mulf %63, %61 : vector<1x32xf32>
    %65 = arith.addf %62, %64 : vector<1x32xf32>
    %c0_33 = arith.constant 0 : index
    %c0_34 = arith.constant 0 : index
    %66 = vector.load %arg8[%c0_33, %c0_34] : memref<8x32xf32, #tpu.memory_space<vmem>>, vector<1x32xf32>
    tpu.vector_store %arg8[%c0_33, %c0_34], %52 {strides = array<i32>} : memref<8x32xf32, #tpu.memory_space<vmem>>, vector<1x32xf32>,
    %67 = arith.addf %49, %37 : vector<1x32xf32>
    %c1_35 = arith.constant 1 : index
    %c0_36 = arith.constant 0 : index
    %68 = vector.load %arg8[%c1_35, %c0_36] : memref<8x32xf32, #tpu.memory_space<vmem>>, vector<1x32xf32>
    tpu.vector_store %arg8[%c1_35, %c0_36], %67 {strides = array<i32>} : memref<8x32xf32, #tpu.memory_space<vmem>>, vector<1x32xf32>,
    %c2_37 = arith.constant 2 : index
    %c0_38 = arith.constant 0 : index
    %69 = vector.load %arg8[%c2_37, %c0_38] : memref<8x32xf32, #tpu.memory_space<vmem>>, vector<1x32xf32>
    tpu.vector_store %arg8[%c2_37, %c0_38], %65 {strides = array<i32>} : memref<8x32xf32, #tpu.memory_space<vmem>>, vector<1x32xf32>,
    return
  }
  func.func @transform_0(%arg0: i32) -> (i32, i32, i32) {
    %c0_i32 = arith.constant 0 : i32
    %c0_i32_0 = arith.constant 0 : i32
    %c0_i32_1 = arith.constant 0 : i32
    return %arg0, %c0_i32, %c0_i32_0 : i32, i32, i32
  }
  func.func @transform_1(%arg0: i32) -> (i32, i32, i32) {
    %c0_i32 = arith.constant 0 : i32
    %c0_i32_0 = arith.constant 0 : i32
    %c0_i32_1 = arith.constant 0 : i32
    return %arg0, %c0_i32, %c0_i32_0 : i32, i32, i32
  }
  func.func @transform_2(%arg0: i32) -> (i32, i32, i32) {
    %c0_i32 = arith.constant 0 : i32
    %c0_i32_0 = arith.constant 0 : i32
    %c0_i32_1 = arith.constant 0 : i32
    return %arg0, %c0_i32, %c0_i32_0 : i32, i32, i32
  }
  func.func @transform_3(%arg0: i32) -> (i32, i32) {
    %c0_i32 = arith.constant 0 : i32
    %c0_i32_0 = arith.constant 0 : i32
    %c0_i32_1 = arith.constant 0 : i32
    return %c0_i32, %c0_i32_0 : i32, i32
  }
  func.func @transform_4(%arg0: i32) -> (i32, i32) {
    %c0_i32 = arith.constant 0 : i32
    %c0_i32_0 = arith.constant 0 : i32
    %c0_i32_1 = arith.constant 0 : i32
    return %c0_i32, %c0_i32_0 : i32, i32
  }
  func.func @transform_5(%arg0: i32) -> (i32, i32) {
    %c0_i32 = arith.constant 0 : i32
    %c0_i32_0 = arith.constant 0 : i32
    %c0_i32_1 = arith.constant 0 : i32
    return %c0_i32, %c0_i32_0 : i32, i32
  }
  func.func @transform_6(%arg0: i32) -> (i32, i32, i32) {
    %c0_i32 = arith.constant 0 : i32
    %c0_i32_0 = arith.constant 0 : i32
    %c0_i32_1 = arith.constant 0 : i32
    return %arg0, %c0_i32, %c0_i32_0 : i32, i32, i32
  }
  func.func @transform_7(%arg0: i32) -> (i32, i32) {
    %c0_i32 = arith.constant 0 : i32
    %c0_i32_0 = arith.constant 0 : i32
    %c0_i32_1 = arith.constant 0 : i32
    return %c0_i32, %c0_i32_0 : i32, i32
  }
}

module attributes {stable_mosaic.version = 11 : i64} {
  func.func @head_kernel(%arg0: i32, %arg1: memref<8x8x32xf32, #tpu.memory_space<vmem>>, %arg2: memref<8x8x1xf32, #tpu.memory_space<vmem>>, %arg3: memref<8x32xf32, #tpu.memory_space<vmem>>, %arg4: memref<40x64xf32, #tpu.memory_space<vmem>>, %arg5: memref<72x128xf32, #tpu.memory_space<vmem>>, %arg6: memref<8x128xf32, #tpu.memory_space<vmem>>) attributes {dimension_semantics = [#tpu.dimension_semantics<parallel>], iteration_bounds = array<i64: 1>, scalar_prefetch = 0 : i64, scratch_operands = 0 : i64, tpu.core_type = #tpu.core_type<tc>, window_params = [{transform_indices = @transform_0, window_bounds = array<i64: 8, 8, 32>}, {transform_indices = @transform_1, window_bounds = array<i64: 8, 8, 1>}, {pipeline_mode = #tpu.pipeline_mode<synchronous>, transform_indices = @transform_2, window_bounds = array<i64: 8, 32>}, {pipeline_mode = #tpu.pipeline_mode<synchronous>, transform_indices = @transform_3, window_bounds = array<i64: 40, 64>}, {pipeline_mode = #tpu.pipeline_mode<synchronous>, transform_indices = @transform_4, window_bounds = array<i64: 72, 128>}, {transform_indices = @transform_5, window_bounds = array<i64: 8, 128>}]} {
    %c0 = arith.constant 0 : index
    %c0_0 = arith.constant 0 : index
    %c0_1 = arith.constant 0 : index
    %0 = vector.load %arg1[%c0, %c0_0, %c0_1] : memref<8x8x32xf32, #tpu.memory_space<vmem>>, vector<8x8x32xf32>
    %1 = vector.shape_cast %0 : vector<8x8x32xf32> to vector<64x32xf32>
    %c0_2 = arith.constant 0 : index
    %c0_3 = arith.constant 0 : index
    %c0_4 = arith.constant 0 : index
    %2 = vector.load %arg2[%c0_2, %c0_3, %c0_4] : memref<8x8x1xf32, #tpu.memory_space<vmem>>, vector<8x8x1xf32>
    %3 = vector.shape_cast %2 : vector<8x8x1xf32> to vector<64x1xf32>
    %c0_5 = arith.constant 0 : index
    %c0_6 = arith.constant 0 : index
    %4 = vector.load %arg3[%c0_5, %c0_6] : memref<8x32xf32, #tpu.memory_space<vmem>>, vector<1x32xf32>
    %c1 = arith.constant 1 : index
    %c0_7 = arith.constant 0 : index
    %5 = vector.load %arg3[%c1, %c0_7] : memref<8x32xf32, #tpu.memory_space<vmem>>, vector<1x32xf32>
    %6 = vector.broadcast %4 : vector<1x32xf32> to vector<64x32xf32>
    %7 = arith.mulf %1, %6 : vector<64x32xf32>
    %8 = vector.broadcast %5 : vector<1x32xf32> to vector<64x32xf32>
    %9 = arith.addf %7, %8 : vector<64x32xf32>
    %cst = arith.constant 0.000000e+00 : f32
    %10 = vector.broadcast %cst : f32 to vector<64x32xf32>
    %11 = arith.maximumf %9, %10 : vector<64x32xf32>
    %cst_8 = arith.constant 0.000000e+00 : f32
    %12 = vector.broadcast %cst_8 : f32 to vector<64x1xf32>
    %13 = arith.cmpf ogt, %3, %12 : vector<64x1xf32>
    %cst_9 = arith.constant -1.000000e+30 : f32
    %14 = vector.shape_cast %13 : vector<64x1xi1> to vector<64x1xi1>
    %15 = vector.broadcast %14 : vector<64x1xi1> to vector<64x32xi1>
    %16 = vector.broadcast %cst_9 : f32 to vector<64x32xf32>
    %17 = arith.select %15, %11, %16 : vector<64x32xi1>, vector<64x32xf32>
    %18 = vector.shape_cast %17 : vector<64x32xf32> to vector<8x8x32xf32>
    %cst_10 = arith.constant dense<0xFF800000> : vector<8x32xf32>
    %19 = vector.multi_reduction <maximumf>, %18, %cst_10 [1] : vector<8x8x32xf32> to vector<8x32xf32>
    %cst_11 = arith.constant dense<0.000000e+00> : vector<8x1xf32>
    %20 = vector.multi_reduction <add>, %2, %cst_11 [1] : vector<8x8x1xf32> to vector<8x1xf32>
    %cst_12 = arith.constant 0.000000e+00 : f32
    %21 = vector.broadcast %cst_12 : f32 to vector<8x1xf32>
    %22 = arith.cmpf ogt, %20, %21 : vector<8x1xf32>
    %cst_13 = arith.constant 0.000000e+00 : f32
    %23 = vector.shape_cast %22 : vector<8x1xi1> to vector<8x1xi1>
    %24 = vector.broadcast %23 : vector<8x1xi1> to vector<8x32xi1>
    %25 = vector.broadcast %cst_13 : f32 to vector<8x32xf32>
    %26 = arith.select %24, %19, %25 : vector<8x32xi1>, vector<8x32xf32>
    %c0_14 = arith.constant 0 : index
    %c0_15 = arith.constant 0 : index
    %27 = vector.load %arg4[%c0_14, %c0_15] : memref<40x64xf32, #tpu.memory_space<vmem>>, vector<40x64xf32>
    %28 = vector.extract_strided_slice %27 {offsets = [0, 0], sizes = [32, 64], strides = [1, 1]} : vector<40x64xf32> to vector<32x64xf32>
    %29 = vector.extract_strided_slice %27 {offsets = [32, 0], sizes = [1, 64], strides = [1, 1]} : vector<40x64xf32> to vector<1x64xf32>
    %c0_16 = arith.constant 0 : index
    %c0_17 = arith.constant 0 : index
    %30 = vector.load %arg5[%c0_16, %c0_17] : memref<72x128xf32, #tpu.memory_space<vmem>>, vector<72x128xf32>
    %31 = vector.extract_strided_slice %30 {offsets = [0, 0], sizes = [64, 128], strides = [1, 1]} : vector<72x128xf32> to vector<64x128xf32>
    %32 = vector.extract_strided_slice %30 {offsets = [64, 0], sizes = [1, 128], strides = [1, 1]} : vector<72x128xf32> to vector<1x128xf32>
    %cst_18 = arith.constant dense<0.000000e+00> : vector<8x64xf32>
    %33 = tpu.matmul %26, %28, %cst_18 {dimension_numbers = #tpu.dot_dimension_numbers<[1], [0], [0], [1], [0, 0, 1, 1], [], []>} : vector<8x32xf32>, vector<32x64xf32>, vector<8x64xf32> -> vector<8x64xf32>
    %34 = vector.broadcast %29 : vector<1x64xf32> to vector<8x64xf32>
    %35 = arith.addf %33, %34 : vector<8x64xf32>
    %cst_19 = arith.constant 0.000000e+00 : f32
    %36 = vector.broadcast %cst_19 : f32 to vector<8x64xf32>
    %37 = arith.maximumf %35, %36 : vector<8x64xf32>
    %cst_20 = arith.constant dense<0.000000e+00> : vector<8x128xf32>
    %38 = tpu.matmul %37, %31, %cst_20 {dimension_numbers = #tpu.dot_dimension_numbers<[1], [0], [0], [1], [0, 0, 1, 1], [], []>} : vector<8x64xf32>, vector<64x128xf32>, vector<8x128xf32> -> vector<8x128xf32>
    %39 = vector.broadcast %32 : vector<1x128xf32> to vector<8x128xf32>
    %40 = arith.addf %38, %39 : vector<8x128xf32>
    %c0_21 = arith.constant 0 : index
    %c0_22 = arith.constant 0 : index
    %41 = vector.load %arg6[%c0_21, %c0_22] : memref<8x128xf32, #tpu.memory_space<vmem>>, vector<8x128xf32>
    tpu.vector_store %arg6[%c0_21, %c0_22], %40 {strides = array<i32>} : memref<8x128xf32, #tpu.memory_space<vmem>>, vector<8x128xf32>,
    return
  }
  func.func @transform_0(%arg0: i32) -> (i32, i32, i32) {
    %c0_i32 = arith.constant 0 : i32
    %c0_i32_0 = arith.constant 0 : i32
    %c0_i32_1 = arith.constant 0 : i32
    return %arg0, %c0_i32, %c0_i32_0 : i32, i32, i32
  }
  func.func @transform_1(%arg0: i32) -> (i32, i32, i32) {
    %c0_i32 = arith.constant 0 : i32
    %c0_i32_0 = arith.constant 0 : i32
    %c0_i32_1 = arith.constant 0 : i32
    return %arg0, %c0_i32, %c0_i32_0 : i32, i32, i32
  }
  func.func @transform_2(%arg0: i32) -> (i32, i32) {
    %c0_i32 = arith.constant 0 : i32
    %c0_i32_0 = arith.constant 0 : i32
    %c0_i32_1 = arith.constant 0 : i32
    return %c0_i32, %c0_i32_0 : i32, i32
  }
  func.func @transform_3(%arg0: i32) -> (i32, i32) {
    %c0_i32 = arith.constant 0 : i32
    %c0_i32_0 = arith.constant 0 : i32
    %c0_i32_1 = arith.constant 0 : i32
    return %c0_i32, %c0_i32_0 : i32, i32
  }
  func.func @transform_4(%arg0: i32) -> (i32, i32) {
    %c0_i32 = arith.constant 0 : i32
    %c0_i32_0 = arith.constant 0 : i32
    %c0_i32_1 = arith.constant 0 : i32
    return %c0_i32, %c0_i32_0 : i32, i32
  }
  func.func @transform_5(%arg0: i32) -> (i32, i32) {
    %c0_i32 = arith.constant 0 : i32
    %c0_i32_0 = arith.constant 0 : i32
    return %arg0, %c0_i32 : i32, i32
  }
}

</mosaic_0001>

<bundles_post_ra>
// kernel: mnist_sp_net_forward.3
= control target key start
LH: loop header
LB: loop body
LE: loop exit
PB: predicated region body
PF: predicated region fallthrough
CT: control target
= control target key end

     0   :  { %vm61_vm0 = vcmask 64512   ;;  %v1447_v9 = vmov 0.0   ;;  %vm1448_vm1 = vmmov 0   ;;  %vm775_vm2 = vcmask 261120   ;;  %s1450_s9 = smov 1.0   ;;  %s1798_s3 = inlined_call_operand.vmem [shape: f32[136,32], index: 3, kind: input, shape index: {}]   ;;  %s1799_s0 = inlined_call_operand.vmem [shape: f32[8,8,8], index: 0, kind: input, shape index: {}]   ;;  %s1800_s4 = inlined_call_operand.vmem [shape: f32[8,32], index: 4, kind: input, shape index: {}]   ;;  %s1801_s1 = inlined_call_operand.vmem [shape: f32[8,8,8], index: 1, kind: input, shape index: {}]   ;;  %s1802_s2 = inlined_call_operand.vmem [shape: f32[8,8,1], index: 2, kind: input, shape index: {}]   ;;  %s1803_s6 = inlined_call_operand.vmem [shape: f32[8,32], index: 6, kind: output, shape index: {1}]   ;;  %s1804_s5 = inlined_call_operand.vmem [shape: f32[8,8,32], index: 5, kind: output, shape index: {0}]  }
   0x1   :  { %v46_v0 = vld [vmem:[%s1798_s3] sm:$0xff]  ;;  %v23_v2 = vld [vmem:[%s1799_s0 + $0x8] sm:$0xff]  ;;  %v24_v3 = vld [vmem:[%s1799_s0 + $0x10] sm:$0xff]  ;;  %1349 = vmatprep.subr.mxu0 %v1447_v9  ;;  %1351 = vmatprep.mubr.msk.f32.mxu0 %vm1448_vm1, %v1447_v9  ;;  %vm1107_vm3 = vcmask 7168   ;;  %1058 = vst.msk [vmem:[%s1803_s6] sm:$0xff] %vm775_vm2, %v1447_v9  ;;  %vm1219_vm4 = vcmask 253952  }
   0x2   :  { %v22_v1 = vld [vmem:[%s1799_s0] sm:$0xff]  ;;  %1315 = vmatprep.subr.mxu1 %v46_v0  ;;  %v25_v4 = vld [vmem:[%s1799_s0 + $0x18] sm:$0xff]  ;;  %v27_v6 = vld [vmem:[%s1799_s0 + $0x28] sm:$0xff] }
   0x3   :  { %1317 = vmatprep.mubr.msk.f32.mxu1 %vm61_vm0, %v22_v1  ;;  %1316 = vmatpush3.msra.mxu1 %v46_v0  ;;  %v26_v5 = vld [vmem:[%s1799_s0 + $0x20] sm:$0xff]  ;;  %v28_v7 = vld [vmem:[%s1799_s0 + $0x30] sm:$0xff]  ;;  %v29_v8 = vld [vmem:[%s1799_s0 + $0x38] sm:$0xff] }
   0x4   :  { %1318 = vmatmul.mubr.msk.f32.vlgmr.msra.gmra.mrb[0].mxu1 %vm61_vm0, %v23_v2  ;;  %1329 = vmatprep.subr.mxu1 %v1447_v9  ;;  %v1232_v10 = vld [vmem:[%s1800_s4] ss:$0 sm:$0xff]  ;;  %v31_v19 = vld [vmem:[%s1801_s1 + $0x8] sm:$0xff]  ;;  %v32_v23 = vld [vmem:[%s1801_s1 + $0x10] sm:$0xff] }
   0x5   :  { %1320 = vmatprep.mubr.msk.f32.mxu1 %vm61_vm0, %v24_v3  ;;  %v30_v14 = vld [vmem:[%s1801_s1] sm:$0xff]  ;;  %v51_v25 = vld [vmem:[%s1798_s3 + $0x28] sm:$0xff]  ;;  %v52_v26 = vld [vmem:[%s1798_s3 + $0x30] sm:$0xff] }
   0x6   :  { %v34_v24 = vld [vmem:[%s1801_s1 + $0x20] sm:$0xff]  ;;  %v53_v30 = vld [vmem:[%s1798_s3 + $0x38] sm:$0xff]  ;;  %v36_v34 = vld [vmem:[%s1801_s1 + $0x30] sm:$0xff]  ;;  %v1409_v35 = vpack.c.bf16 %v52_v26, %v51_v25 }
   0x7   :  { %v54_v31 = vld [vmem:[%s1798_s3 + $0x40] sm:$0xff]  ;;  %v33_v33 = vld [vmem:[%s1801_s1 + $0x18] sm:$0xff]  ;;  %v47_v38 = vld [vmem:[%s1798_s3 + $0x8] sm:$0xff] }
   0x8   :  { %1321 = vmatmul.mubr.msk.f32.gmra.mrb[2].mxu1 %vm61_vm0, %v25_v4  ;;  %v1413_v37 = vpack.c.bf16 %v54_v31, %v53_v30  ;;  %v48_v39 = vld [vmem:[%s1798_s3 + $0x10] sm:$0xff]  ;;  %v35_v41 = vld [vmem:[%s1801_s1 + $0x28] sm:$0xff]  ;;  %v49_v43 = vld [vmem:[%s1798_s3 + $0x18] sm:$0xff] }
   0x9   :  { %1323 = vmatprep.mubr.msk.f32.mxu1 %vm61_vm0, %v26_v5  ;;  %v1417_v42 = vpack.c.bf16 %v48_v39, %v47_v38  ;;  %v50_v44 = vld [vmem:[%s1798_s3 + $0x20] sm:$0xff]  ;;  %v37_v45 = vld [vmem:[%s1801_s1 + $0x38] sm:$0xff]  ;;  %v39_v48 = vld [vmem:[%s1802_s2 + $0x8] sm:$0xff] }
   0xa   :  { %v1421_v46 = vpack.c.bf16 %v50_v44, %v49_v43  ;;  %v38_v47 = vld [vmem:[%s1802_s2] sm:$0xff]  ;;  %v1109_v50 = vsel %vm1107_vm3, %v39_v48, 0.0  ;;  %v40_v51 = vld [vmem:[%s1802_s2 + $0x10] sm:$0xff]  ;;  %v41_v54 = vld [vmem:[%s1802_s2 + $0x18] sm:$0xff] }
   0xb   :  { %v1108_v49 = vsel %vm1107_vm3, %v38_v47, 0.0  ;;  %v1111_v53 = vsel %vm1107_vm3, %v40_v51, 0.0  ;;  %v1113_v56 = vsel %vm1107_vm3, %v41_v54, 0.0  ;;  %v42_v57 = vld [vmem:[%s1802_s2 + $0x20] sm:$0xff]  ;;  %v43_v60 = vld [vmem:[%s1802_s2 + $0x28] sm:$0xff]  ;;  %v44_v63 = vld [vmem:[%s1802_s2 + $0x30] sm:$0xff] }
   0xc   :  { %1324 = vmatmul.mubr.msk.f32.gmra.mrb[4].mxu1 %vm61_vm0, %v27_v6  ;;  %v1110_v52 = vadd.f32 %v1109_v50, %v1108_v49  ;;  %v1115_v59 = vsel %vm1107_vm3, %v42_v57, 0.0  ;;  %v1117_v62 = vsel %vm1107_vm3, %v43_v60, 0.0  ;;  %v1119_v1 = vsel %vm1107_vm3, %v44_v63, 0.0  ;;  %v45_v2 = vld [vmem:[%s1802_s2 + $0x38] sm:$0xff]  ;;  %v1666_v31 = vld [vmem:[%s1803_s6] sm:$0x1] }
   0xd   :  { %1326 = vmatprep.mubr.msk.f32.mxu1 %vm61_vm0, %v28_v7  ;;  %v1121_v4 = vsel %vm1107_vm3, %v45_v2, 0.0  ;;  %v1449_v6 = vmov 0  }
   0xe   :  { %v1112_v55 = vadd.f32 %v1111_v53, %v1110_v52  ;;  %1440 = vset.pattern.permute.xlu1 %v1449_v6  ;;  %1439 = vset.pattern.permute.xlu0 %v1449_v6 }
   0xf   :  { %1066 = vperm.xlu1 %1440, %v39_v48  }
  0x10   :  { %1327 = vmatmul.mubr.msk.f32.gmra.mrb[6].mxu1 %vm61_vm0, %v29_v8  ;;  %v1114_v58 = vadd.f32 %v1113_v56, %v1112_v55 }
  0x11   :  { %1331 = vmatprep.mubr.msk.f32.mxu1 %vm1448_vm1, %v1447_v9 }
  0x12   :  { %v1116_v61 = vadd.f32 %v1115_v59, %v1114_v58 }
  0x13   :  { %1071 = vperm.xlu1 %1440, %v40_v51  }
  0x14   :  { %v1118_v0 = vadd.f32 %v1117_v62, %v1116_v61 }
  0x16   :  { %v1120_v3 = vadd.f32 %v1119_v1, %v1118_v0 }
  0x17   :  { %1076 = vperm.xlu1 %1440, %v41_v54  }
  0x18   :  { %v1122_v5 = vadd.f32 %v1121_v4, %v1120_v3 }
  0x1a   :  { %1123 = vadd.xlane.f32.xlu0 %v1122_v5 }
  0x1b   :  { %1081 = vperm.xlu1 %1440, %v42_v57  }
  0x1f   :  { %1086 = vperm.xlu1 %1440, %v43_v60  }
  0x23   :  { %1091 = vperm.xlu1 %1440, %v44_v63  }
  0x27   :  { %1096 = vperm.xlu1 %1440, %v45_v2  }
  0x30   :  { %1061 = vperm.xlu0 %1439, %v38_v47  }
  0xd7   :  { %v1319_v11 = vpop.f32.mrb[0].mxu1 }
  0xd8   :  { %v152_v12 = vpop.f32.mrb[1].mxu1  ;;  %v1533_v15 = vadd.f32 %v1319_v11, %v1232_v10 }
  0xd9   :  { %v153_v13 = vadd.f32 %v1232_v10, %v152_v12 }
  0xdb   :  { %1330 = vmatpush3.msra.mxu1 %v153_v13  ;;  %v1322_v16 = vpop.f32.mrb[2].mxu1 }
  0xdc   :  { %1332 = vmatmul.mubr.msk.f32.vlgmr.msra.gmra.mrb[8].mxu1 %vm61_vm0, %v30_v14  ;;  %1334 = vmatprep.subr.mxu1 %v1447_v9  ;;  %v162_v17 = vpop.f32.mrb[3].mxu1  ;;  %v168_v27 = vadd.f32 %v1322_v16, %v1232_v10 }
  0xdd   :  { %1335 = vmatpush3.msra.mxu1 %v1533_v15  ;;  %v163_v18 = vadd.f32 %v1232_v10, %v162_v17  ;;  %1336 = vmatprep.mubr.msk.f32.mxu1 %vm1448_vm1, %v1447_v9 }
  0xde   :  { %1339 = vmatprep.subr.mxu1 %v1447_v9 }
  0xdf   :  { %v1325_v20 = vpop.f32.mrb[4].mxu1 }
  0xe0   :  { %v172_v21 = vpop.f32.mrb[5].mxu1  ;;  %1337 = vmatmul.mubr.msk.f32.vlgmr.msra.gmra.mrb[10].mxu1 %vm61_vm0, %v31_v19  ;;  %v178_v36 = vadd.f32 %v1325_v20, %v1232_v10 }
  0xe1   :  { %v173_v22 = vadd.f32 %v1232_v10, %v172_v21  ;;  %1340 = vmatpush3.msra.mxu1 %v163_v18  ;;  %1341 = vmatprep.mubr.msk.f32.mxu1 %vm1448_vm1, %v1447_v9 }
  0xe2   :  { %1344 = vmatprep.subr.mxu1 %v1447_v9 }
  0xe3   :  { %v1328_v28 = vpop.f32.mrb[6].mxu1  ;;  %1350 = vmatpush3.msra.mxu0 %v173_v22 }
  0xe4   :  { %v182_v29 = vpop.f32.mrb[7].mxu1  ;;  %1342 = vmatmul.mubr.msk.f32.vlgmr.msra.gmra.mrb[12].mxu1 %vm61_vm0, %v32_v23  ;;  %1352 = vmatmul.mubr.msk.f32.vlgmr.msra.gmra.mrb[0].mxu0 %vm61_vm0, %v34_v24  ;;  %v188_v40 = vadd.f32 %v1328_v28, %v1232_v10  ;;  %v1124_v24 = vpop.xlane.xlu0 %1123 }
  0xe5   :  { %v183_v32 = vadd.f32 %v1232_v10, %v182_v29  ;;  %1359 = vmatprep.subr.mxu0 %v1447_v9  ;;  %1345 = vmatpush3.msra.mxu1 %v168_v27  ;;  %v1125_v25 = vrot.slane %v1124_v24, 4 }
  0xe6   :  { %1346 = vmatprep.mubr.msk.f32.mxu1 %vm1448_vm1, %v1447_v9  ;;  %1361 = vmatprep.mubr.msk.f32.mxu0 %vm1448_vm1, %v1447_v9 }
  0xe7   :  { %1360 = vmatpush3.msra.mxu0 %v183_v32  ;;  %1354 = vmatprep.subr.mxu1 %v1447_v9  ;;  %v1126_v26 = vadd.f32 %v1125_v25, %v1124_v24  ;;  %v1207_v24 = vmax.f32 %v1666_v31, 1.0 }
  0xe8   :  { %1347 = vmatmul.mubr.msk.f32.vlgmr.msra.gmra.mrb[14].mxu1 %vm61_vm0, %v33_v33  ;;  %1362 = vmatmul.mubr.msk.f32.vlgmr.msra.gmra.mrb[2].mxu0 %vm61_vm0, %v36_v34 }
  0xe9   :  { %1410 = vmatprep.subr.bf16.mxu0 %v1409_v35  ;;  %1377 = vmatprep.mubr.msk.f32.mxu0 %vm775_vm2, %v153_v13 }
  0xea   :  { %1412 = vmatpush3.bf16.msra.mxu0 %v1409_v35  ;;  %1355 = vmatpush3.msra.mxu1 %v178_v36 }
  0xeb   :  { %1356 = vmatprep.mubr.msk.f32.mxu1 %vm1448_vm1, %v1447_v9  ;;  %1414 = vmatprep.subr.bf16.mxu0 %v1413_v37 }
  0xec   :  { %1357 = vmatmul.mubr.msk.f32.vlgmr.msra.gmra.mrb[16].mxu1 %vm61_vm0, %v35_v41  ;;  %1364 = vmatprep.subr.mxu1 %v1447_v9 }
  0xed   :  { %1365 = vmatpush3.msra.mxu1 %v188_v40  ;;  %1366 = vmatprep.mubr.msk.f32.mxu1 %vm1448_vm1, %v1447_v9  ;;  %v1677_v9 = vpop.permute.xlu1 %1066 }
  0xee   :  { %1416 = vmatpush3.bf16.msra.mxu0 %v1413_v37 }
  0xef   :  { %1418 = vmatprep.subr.bf16.mxu0 %v1417_v42 }
  0xf0   :  { %1367 = vmatmul.mubr.msk.f32.vlgmr.msra.gmra.mrb[18].mxu1 %vm61_vm0, %v37_v45  ;;  %v1690_v45 = vpop.permute.xlu0 %1061 }
  0xf1   :  { %1378 = vmatmul.mubr.msk.f32.vlgmr.msra.gmra.mrb[4].mxu0 %vm775_vm2, %v1533_v15  ;;  %v1679_v38 = vpop.permute.xlu1 %1071 }
  0xf2   :  { %1380 = vmatprep.mubr.msk.f32.mxu0 %vm775_vm2, %v163_v18  ;;  %1420 = vmatpush3.bf16.msra.mxu0 %v1417_v42 }
  0xf3   :  { %1422 = vmatprep.subr.bf16.mxu0 %v1421_v46 }
  0xf5   :  { %1381 = vmatmul.mubr.msk.f32.gmra.mrb[6].mxu0 %vm775_vm2, %v168_v27  ;;  %v1127_v27 = vrot.slane %v1126_v26, 2  ;;  %v1681_v39 = vpop.permute.xlu1 %1076 }
  0xf6   :  { %1383 = vmatprep.mubr.msk.f32.mxu0 %vm775_vm2, %v173_v22  ;;  %1424 = vmatpush3.bf16.msra.mxu0 %v1421_v46 }
  0xf7   :  { %v1128_v28 = vadd.f32 %v1127_v27, %v1126_v26 }
  0xf9   :  { %1384 = vmatmul.mubr.msk.f32.gmra.mrb[8].mxu0 %vm775_vm2, %v178_v36  ;;  %v1129_v29 = vrot.slane %v1128_v28, 1  ;;  %v1686_v41 = vpop.permute.xlu1 %1081 }
  0xfa   :  { %1386 = vmatprep.mubr.msk.f32.mxu0 %vm775_vm2, %v183_v32 }
  0xfb   :  { %v1130_v30 = vadd.f32 %v1129_v29, %v1128_v28  ;;  %v1203_v29 = vld [vmem:[%s1803_s6 + $0x1] sm:$0x1] }
  0xfd   :  { %1387 = vmatmul.mubr.msk.f32.gmra.mrb[10].mxu0 %vm775_vm2, %v188_v40  ;;  %1433 = vpush %v1130_v30  ;;  %v1265_v40 = vld [vmem:[%s1800_s4 + $0x1] ss:$0 sm:$0xff]  ;;  %v1710_v52 = vpop.permute.xlu1 %1086 }
 0x101   :  { %v1730_v60 = vpop.permute.xlu1 %1091 }
 0x12e   :  { %s1661_s14 = spop %1433 }
 0x12f   :  { %v1205_v32 = vstv %s1661_s14  ;;  %s1153_s10 = smax.f32 %s1450_s9, %s1661_s14 }
 0x130   :  { %v1206_v33 = vadd.f32 %v1205_v32, %v1666_v31  ;;  %v1211_v35 = vmul.f32 %v1205_v32, %v1666_v31 }
 0x132   :  { %v1212_v34 = vmax.f32 %v1206_v33, 1.0  ;;  %1220 = vst.msk [vmem:[%s1803_s6] sm:$0x1] %vm1219_vm4, %v1206_v33 }
 0x134   :  { %1441 = vrcp.f32 %v1212_v34 }
 0x13e   :  { %v1442_v36 = vpop.eup %1441 }
 0x13f   :  { %v1671_v37 = vmul.f32 %v1442_v36, %v1211_v35 }
 0x1af   :  { %v260_v7 = vpop.f32.mrb[8].mxu1 }
 0x1b0   :  { %v1333_v8 = vpop.f32.mrb[9].mxu1  ;;  %1397 = vmatprep.mubr.msk.f32.mxu0 %vm775_vm2, %v260_v7 }
 0x1b3   :  { %v333_v10 = vpop.f32.mrb[10].mxu1 }
 0x1b4   :  { %1398 = vmatmul.mubr.msk.f32.vlgmr.msra.gmra.mrb[4].mxu0 %vm775_vm2, %v333_v10  ;;  %v1338_v11 = vpop.f32.mrb[11].mxu1 }
 0x1b7   :  { %v406_v12 = vpop.f32.mrb[12].mxu1  ;;  %v552_v13 = vpop.f32.mrb[0].mxu0 }
 0x1b8   :  { %v1343_v14 = vpop.f32.mrb[13].mxu1  ;;  %1400 = vmatprep.mubr.msk.f32.mxu0 %vm775_vm2, %v406_v12  ;;  %v1353_v15 = vpop.f32.mrb[1].mxu0 }
 0x1b9   :  { %v1097_v12 = vpop.permute.xlu1 %1096 }
 0x1bb   :  { %v479_v16 = vpop.f32.mrb[14].mxu1  ;;  %v698_v17 = vpop.f32.mrb[2].mxu0 }
 0x1bc   :  { %1401 = vmatmul.mubr.msk.f32.gmra.mrb[6].mxu0 %vm775_vm2, %v479_v16  ;;  %v1348_v18 = vpop.f32.mrb[15].mxu1  ;;  %v1363_v19 = vpop.f32.mrb[3].mxu0 }
 0x1bd   :  { %1403 = vmatprep.mubr.msk.f32.mxu0 %vm775_vm2, %v552_v13 }
 0x1bf   :  { %v625_v20 = vpop.f32.mrb[16].mxu1 }
 0x1c0   :  { %1404 = vmatmul.mubr.msk.f32.gmra.mrb[8].mxu0 %vm775_vm2, %v625_v20  ;;  %v1358_v21 = vpop.f32.mrb[17].mxu1 }
 0x1c1   :  { %1406 = vmatprep.mubr.msk.f32.mxu0 %vm775_vm2, %v698_v17 }
 0x1c3   :  { %v771_v22 = vpop.f32.mrb[18].mxu1 }
 0x1c4   :  { %1407 = vmatmul.mubr.msk.f32.gmra.mrb[10].mxu0 %vm775_vm2, %v771_v22  ;;  %v1368_v23 = vpop.f32.mrb[19].mxu1  ;;  %v1154_v22 = vstv %s1153_s10 }
 0x1c5   :  { %1443 = vrcp.f32 %v1154_v22 }
 0x1c6   :  { %1445 = vrcp.f32 %v1207_v24 }
 0x1cf   :  { %v1444_v32 = vpop.eup %1443 }
 0x1d0   :  { %v1446_v35 = vpop.eup %1445 }
 0x287   :  { %v1399_v42 = vpop.f32.mrb[4].mxu0 }
 0x288   :  { %v1688_v43 = vadd.f32 %v1399_v42, %v1265_v40  ;;  %v995_v44 = vpop.f32.mrb[5].mxu0 }
 0x289   :  { %v1692_v46 = vadd.f32 %v1265_v40, %v995_v44 }
 0x28a   :  { %1047 = vst.msk [vmem:[%s1804_s5 + $0x8] sm:$0xff] %vm775_vm2, %v1688_v43  ;;  %v1100_v47 = vmul.f32 %v1677_v9, %v1688_v43 }
 0x28b   :  { %1046 = vst.msk [vmem:[%s1804_s5] sm:$0xff] %vm775_vm2, %v1692_v46  ;;  %v1099_v48 = vmul.f32 %v1690_v45, %v1692_v46 }
 0x28c   :  { %v1133_v49 = vsel %vm775_vm2, %v1100_v47, 0.0 }
 0x28d   :  { %v1132_v50 = vsel %vm775_vm2, %v1099_v48, 0.0 }
 0x28e   :  { %v1134_v51 = vadd.f32 %v1133_v49, %v1132_v50 }
 0x28f   :  { %v1402_v53 = vpop.f32.mrb[6].mxu0 }
 0x290   :  { %v1712_v54 = vadd.f32 %v1402_v53, %v1265_v40  ;;  %v1005_v55 = vpop.f32.mrb[7].mxu0  ;;  %v1209_v53 = vmul.f32 %v1446_v35, %v1203_v29 }
 0x291   :  { %v1714_v56 = vadd.f32 %v1265_v40, %v1005_v55 }
 0x292   :  { %1049 = vst.msk [vmem:[%s1804_s5 + $0x18] sm:$0xff] %vm775_vm2, %v1712_v54  ;;  %v1102_v57 = vmul.f32 %v1681_v39, %v1712_v54 }
 0x293   :  { %1048 = vst.msk [vmem:[%s1804_s5 + $0x10] sm:$0xff] %vm775_vm2, %v1714_v56  ;;  %v1101_v58 = vmul.f32 %v1679_v38, %v1714_v56  ;;  %v1405_v59 = vpop.f32.mrb[8].mxu0 }
 0x294   :  { %v1732_v61 = vadd.f32 %v1405_v59, %v1265_v40  ;;  %v1015_v62 = vpop.f32.mrb[9].mxu0  ;;  %v1137_v2 = vsel %vm775_vm2, %v1102_v57, 0.0 }
 0x295   :  { %v1135_v63 = vsel %vm775_vm2, %v1101_v58, 0.0  ;;  %v1042_v0 = vadd.f32 %v1265_v40, %v1015_v62 }
 0x296   :  { %v1136_v1 = vadd.f32 %v1135_v63, %v1134_v51  ;;  %1051 = vst.msk [vmem:[%s1804_s5 + $0x28] sm:$0xff] %vm775_vm2, %v1732_v61  ;;  %v1104_v3 = vmul.f32 %v1710_v52, %v1732_v61 }
 0x297   :  { %1050 = vst.msk [vmem:[%s1804_s5 + $0x20] sm:$0xff] %vm775_vm2, %v1042_v0  ;;  %v1103_v4 = vmul.f32 %v1686_v41, %v1042_v0  ;;  %v1408_v5 = vpop.f32.mrb[10].mxu0 }
 0x298   :  { %v1138_v6 = vadd.f32 %v1137_v2, %v1136_v1  ;;  %v1045_v7 = vadd.f32 %v1408_v5, %v1265_v40  ;;  %v1025_v8 = vpop.f32.mrb[11].mxu0  ;;  %v1141_v14 = vsel %vm775_vm2, %v1104_v3, 0.0 }
 0x299   :  { %v1139_v10 = vsel %vm775_vm2, %v1103_v4, 0.0  ;;  %v1044_v11 = vadd.f32 %v1265_v40, %v1025_v8 }
 0x29a   :  { %v1140_v13 = vadd.f32 %v1139_v10, %v1138_v6  ;;  %1053 = vst.msk [vmem:[%s1804_s5 + $0x38] sm:$0xff] %vm775_vm2, %v1045_v7  ;;  %v1106_v15 = vmul.f32 %v1097_v12, %v1045_v7 }
 0x29b   :  { %1052 = vst.msk [vmem:[%s1804_s5 + $0x30] sm:$0xff] %vm775_vm2, %v1044_v11  ;;  %v1105_v16 = vmul.f32 %v1730_v60, %v1044_v11 }
 0x29c   :  { %v1142_v17 = vadd.f32 %v1141_v14, %v1140_v13  ;;  %v1145_v20 = vsel %vm775_vm2, %v1106_v15, 0.0 }
 0x29d   :  { %v1143_v18 = vsel %vm775_vm2, %v1105_v16, 0.0 }
 0x29e   :  { %v1144_v19 = vadd.f32 %v1143_v18, %v1142_v17 }
 0x2a0   :  { %v1146_v21 = vadd.f32 %v1145_v20, %v1144_v19 }
 0x2a2   :  { %v1147_v23 = vrot.slane %v1146_v21, 4 }
 0x2a4   :  { %v1148_v25 = vadd.f32 %v1147_v23, %v1146_v21 }
 0x2a6   :  { %v1149_v26 = vrot.slane %v1148_v25, 2 }
 0x2a8   :  { %v1150_v27 = vadd.f32 %v1149_v26, %v1148_v25 }
 0x2aa   :  { %v1151_v28 = vrot.slane %v1150_v27, 1 }
 0x2ac   :  { %v1152_v30 = vadd.f32 %v1151_v28, %v1150_v27 }
 0x2ae   :  { %v1156_v33 = vmul.f32 %v1444_v32, %v1152_v30  ;;  %v1221_v34 = vadd.f32 %v1203_v29, %v1152_v30 }
 0x2b0   :  { %v1157_v36 = vsub.f32 %v1692_v46, %v1156_v33  ;;  %v1158_v40 = vsub.f32 %v1688_v43, %v1156_v33  ;;  %v1159_v31 = vsub.f32 %v1714_v56, %v1156_v33  ;;  %v1160_v42 = vsub.f32 %v1712_v54, %v1156_v33  ;;  %1222 = vst.msk [vmem:[%s1803_s6 + $0x1] sm:$0x1] %vm1219_vm4, %v1221_v34 }
 0x2b1   :  { %v1161_v44 = vsub.f32 %v1042_v0, %v1156_v33  ;;  %v1162_v47 = vsub.f32 %v1732_v61, %v1156_v33  ;;  %v1163_v48 = vsub.f32 %v1044_v11, %v1156_v33  ;;  %v1164_v49 = vsub.f32 %v1045_v7, %v1156_v33 }
 0x2b2   :  { %v1165_v50 = vmul.f32 %v1157_v36, %v1690_v45  ;;  %v1166_v46 = vmul.f32 %v1158_v40, %v1677_v9  ;;  %v1167_v43 = vmul.f32 %v1159_v31, %v1679_v38  ;;  %v1168_v51 = vmul.f32 %v1160_v42, %v1681_v39 }
 0x2b3   :  { %v1169_v54 = vmul.f32 %v1161_v44, %v1686_v41  ;;  %v1170_v58 = vmul.f32 %v1162_v47, %v1710_v52  ;;  %v1171_v9 = vmul.f32 %v1163_v48, %v1730_v60  ;;  %v1210_v39 = vsub.f32 %v1156_v33, %v1209_v53 }
 0x2b4   :  { %v1173_v55 = vmul.f32 %v1165_v50, %v1165_v50  ;;  %v1174_v56 = vmul.f32 %v1166_v46, %v1166_v46  ;;  %v1175_v57 = vmul.f32 %v1167_v43, %v1167_v43  ;;  %v1176_v59 = vmul.f32 %v1168_v51, %v1168_v51 }
 0x2b5   :  { %v1177_v63 = vmul.f32 %v1169_v54, %v1169_v54  ;;  %v1172_v1 = vmul.f32 %v1164_v49, %v1097_v12  ;;  %v1178_v41 = vmul.f32 %v1170_v58, %v1170_v58  ;;  %v1216_v3 = vmul.f32 %v1210_v39, %v1210_v39 }
 0x2b6   :  { %v1181_v61 = vsel %vm775_vm2, %v1173_v55, 0.0  ;;  %v1182_v62 = vsel %vm775_vm2, %v1174_v56, 0.0  ;;  %v1184_v38 = vsel %vm775_vm2, %v1175_v57, 0.0  ;;  %v1186_v2 = vsel %vm775_vm2, %v1176_v59, 0.0 }
 0x2b7   :  { %v1183_v45 = vadd.f32 %v1182_v62, %v1181_v61  ;;  %v1179_v52 = vmul.f32 %v1171_v9, %v1171_v9  ;;  %v1188_v5 = vsel %vm775_vm2, %v1177_v63, 0.0  ;;  %v1217_v6 = vmul.f32 %v1216_v3, %v1671_v37  ;;  %v1204_v37 = vld [vmem:[%s1803_s6 + $0x2] sm:$0x1] }
 0x2b8   :  { %v1180_v8 = vmul.f32 %v1172_v1, %v1172_v1  ;;  %v1190_v60 = vsel %vm775_vm2, %v1178_v41, 0.0 }
 0x2b9   :  { %v1185_v0 = vadd.f32 %v1184_v38, %v1183_v45  ;;  %v1192_v11 = vsel %vm775_vm2, %v1179_v52, 0.0 }
 0x2ba   :  { %v1194_v12 = vsel %vm775_vm2, %v1180_v8, 0.0 }
 0x2bb   :  { %v1187_v4 = vadd.f32 %v1186_v2, %v1185_v0 }
 0x2bd   :  { %v1189_v7 = vadd.f32 %v1188_v5, %v1187_v4 }
 0x2bf   :  { %v1191_v10 = vadd.f32 %v1190_v60, %v1189_v7 }
 0x2c1   :  { %v1193_v13 = vadd.f32 %v1192_v11, %v1191_v10 }
 0x2c3   :  { %v1195_v14 = vadd.f32 %v1194_v12, %v1193_v13 }
 0x2c5   :  { %v1196_v15 = vrot.slane %v1195_v14, 4 }
 0x2c7   :  { %v1197_v16 = vadd.f32 %v1196_v15, %v1195_v14 }
 0x2c9   :  { %v1198_v17 = vrot.slane %v1197_v16, 2 }
 0x2cb   :  { %v1199_v18 = vadd.f32 %v1198_v17, %v1197_v16 }
 0x2cd   :  { %v1200_v19 = vrot.slane %v1199_v18, 1 }
 0x2cf   :  { %v1201_v20 = vadd.f32 %v1200_v19, %v1199_v18 }
 0x2d1   :  { %v1215_v21 = vadd.f32 %v1204_v37, %v1201_v20 }
 0x2d3   :  { %v1218_v22 = vadd.f32 %v1217_v6, %v1215_v21 }
 0x2d5   :  { %1223 = vst.msk [vmem:[%s1803_s6 + $0x2] sm:$0x1] %vm1219_vm4, %v1218_v22 }

// kernel: mnist_sp_net_forward.4
= control target key start
LH: loop header
LB: loop body
LE: loop exit
PB: predicated region body
PF: predicated region fallthrough
CT: control target
= control target key end

     0   :  { %v1319_v0 = vmov 0.0   ;;  %vm1320_vm0 = vmmov 0   ;;  %vm92_vm1 = vcmask 64512   ;;  %vm1009_vm2 = vcmask 7168   ;;  %s1322_s12 = smov 1.0   ;;  %s1719_s0 = inlined_call_operand.vmem [shape: f32[8,8,32], index: 0, kind: input, shape index: {}]   ;;  %s1720_s5 = inlined_call_operand.vmem [shape: f32[8,32], index: 5, kind: input, shape index: {}]   ;;  %s1721_s1 = inlined_call_operand.vmem [shape: f32[8,8,8], index: 1, kind: input, shape index: {}]   ;;  %s1722_s3 = inlined_call_operand.vmem [shape: f32[136,32], index: 3, kind: input, shape index: {}]   ;;  %s1723_s2 = inlined_call_operand.vmem [shape: f32[8,8,1], index: 2, kind: input, shape index: {}]   ;;  %s1724_s7 = inlined_call_operand.vmem [shape: f32[8,32], index: 7, kind: output, shape index: {1}]   ;;  %s1725_s4 = inlined_call_operand.vmem [shape: f32[8,32], index: 4, kind: input, shape index: {}]   ;;  %s1726_s6 = inlined_call_operand.vmem [shape: f32[8,8,32], index: 6, kind: output, shape index: {0}]  }
   0x1   :  { %1201 = vmatprep.subr.mxu0 %v1319_v0  ;;  %v25_v1 = vld [vmem:[%s1719_s0] sm:$0xff]  ;;  %1203 = vmatprep.mubr.msk.f32.mxu0 %vm1320_vm0, %v1319_v0  ;;  %v26_v5 = vld [vmem:[%s1719_s0 + $0x8] sm:$0xff]  ;;  %v27_v7 = vld [vmem:[%s1719_s0 + $0x10] sm:$0xff]  ;;  %vm677_vm3 = vcmask 261120   ;;  %vm1121_vm4 = vcmask 253952  }
   0x2   :  { %v1134_v2 = vld [vmem:[%s1720_s5] ss:$0 sm:$0xff]  ;;  %v1135_v3 = vld [vmem:[%s1720_s5 + $0x1] ss:$0 sm:$0xff]  ;;  %1206 = vmatprep.subr.mxu1 %v1319_v0  ;;  %1208 = vmatprep.mubr.msk.f32.mxu1 %vm1320_vm0, %v1319_v0  ;;  %v28_v8 = vld [vmem:[%s1719_s0 + $0x18] sm:$0xff]  ;;  %960 = vst.msk [vmem:[%s1724_s7] sm:$0xff] %vm677_vm3, %v1319_v0 }
   0x3   :  { %v64_v4 = vmul.f32 %v1134_v2, %v25_v1  ;;  %v65_v6 = vmul.f32 %v1134_v2, %v26_v5  ;;  %v66_v10 = vmul.f32 %v1134_v2, %v27_v7  ;;  %v67_v11 = vmul.f32 %v1134_v2, %v28_v8  ;;  %v29_v12 = vld [vmem:[%s1719_s0 + $0x20] sm:$0xff]  ;;  %v30_v13 = vld [vmem:[%s1719_s0 + $0x28] sm:$0xff]  ;;  %v31_v17 = vld [vmem:[%s1719_s0 + $0x30] sm:$0xff] }
   0x4   :  { %v68_v15 = vmul.f32 %v1134_v2, %v29_v12  ;;  %v69_v16 = vmul.f32 %v1134_v2, %v30_v13  ;;  %v33_v19 = vld [vmem:[%s1721_s1] sm:$0xff]  ;;  %v32_v22 = vld [vmem:[%s1719_s0 + $0x38] sm:$0xff]  ;;  %v34_v24 = vld [vmem:[%s1721_s1 + $0x8] sm:$0xff]  ;;  %v70_v26 = vmul.f32 %v1134_v2, %v31_v17 }
   0x5   :  { %v1387_v9 = vadd.f32 %v1135_v3, %v64_v4  ;;  %v1395_v14 = vadd.f32 %v1135_v3, %v65_v6  ;;  %v1404_v20 = vadd.f32 %v1135_v3, %v66_v10  ;;  %v1406_v21 = vadd.f32 %v1135_v3, %v67_v11  ;;  %v35_v31 = vld [vmem:[%s1721_s1 + $0x10] sm:$0xff]  ;;  %v36_v32 = vld [vmem:[%s1721_s1 + $0x18] sm:$0xff]  ;;  %v37_v37 = vld [vmem:[%s1721_s1 + $0x20] sm:$0xff] }
   0x6   :  { %v1415_v25 = vadd.f32 %v1135_v3, %v68_v15  ;;  %v1421_v29 = vadd.f32 %v1135_v3, %v69_v16  ;;  %v71_v30 = vmul.f32 %v1134_v2, %v32_v22  ;;  %v1438_v34 = vadd.f32 %v1135_v3, %v70_v26  ;;  %v38_v38 = vld [vmem:[%s1721_s1 + $0x28] sm:$0xff]  ;;  %v54_v41 = vld [vmem:[%s1722_s3 + $0x70] sm:$0xff]  ;;  %v55_v45 = vld [vmem:[%s1722_s3 + $0x78] sm:$0xff] }
   0x7   :  { %v84_v18 = vmax.f32 %v1387_v9, 0.0  ;;  %v85_v23 = vmax.f32 %v1395_v14, 0.0  ;;  %v86_v27 = vmax.f32 %v1404_v20, 0.0  ;;  %v87_v28 = vmax.f32 %v1406_v21, 0.0  ;;  %v53_v40 = vld [vmem:[%s1722_s3 + $0x68] sm:$0xff]  ;;  %v50_v44 = vld [vmem:[%s1722_s3 + $0x50] sm:$0xff] }
   0x8   :  { %v88_v33 = vmax.f32 %v1415_v25, 0.0  ;;  %v89_v35 = vmax.f32 %v1421_v29, 0.0  ;;  %v1445_v36 = vadd.f32 %v1135_v3, %v71_v30  ;;  %v90_v39 = vmax.f32 %v1438_v34, 0.0  ;;  %v49_v43 = vld [vmem:[%s1722_s3 + $0x48] sm:$0xff]  ;;  %v56_v46 = vld [vmem:[%s1722_s3 + $0x80] sm:$0xff]  ;;  %v39_v47 = vld [vmem:[%s1721_s1 + $0x30] sm:$0xff] }
   0x9   :  { %1202 = vmatpush3.msra.mxu0 %v84_v18  ;;  %1207 = vmatpush3.msra.mxu1 %v85_v23  ;;  %v1281_v48 = vpack.c.bf16 %v54_v41, %v53_v40  ;;  %v51_v49 = vld [vmem:[%s1722_s3 + $0x58] sm:$0xff]  ;;  %v52_v50 = vld [vmem:[%s1722_s3 + $0x60] sm:$0xff]  ;;  %v1289_v52 = vpack.c.bf16 %v50_v44, %v49_v43  ;;  %v1285_v53 = vpack.c.bf16 %v56_v46, %v55_v45  ;;  %v42_v56 = vld [vmem:[%s1723_s2 + $0x8] sm:$0xff]  ;;  %v1321_v15 = vmov 0  }
   0xa   :  { %1204 = vmatmul.mubr.msk.f32.vlgmr.msra.gmra.mrb[0].mxu0 %vm92_vm1, %v33_v19  ;;  %1211 = vmatprep.subr.mxu0 %v1319_v0  ;;  %v91_v42 = vmax.f32 %v1445_v36, 0.0  ;;  %v40_v51 = vld [vmem:[%s1721_s1 + $0x38] sm:$0xff]  ;;  %v1293_v54 = vpack.c.bf16 %v52_v50, %v51_v49  ;;  %v41_v55 = vld [vmem:[%s1723_s2] sm:$0xff]  ;;  %v1011_v58 = vsel %vm1009_vm2, %v42_v56, 0.0  ;;  %v43_v59 = vld [vmem:[%s1723_s2 + $0x10] sm:$0xff] }
   0xb   :  { %1209 = vmatmul.mubr.msk.f32.vlgmr.msra.gmra.mrb[0].mxu1 %vm92_vm1, %v34_v24  ;;  %1212 = vmatpush3.msra.mxu0 %v86_v27  ;;  %v1010_v57 = vsel %vm1009_vm2, %v41_v55, 0.0  ;;  %v1013_v61 = vsel %vm1009_vm2, %v43_v59, 0.0  ;;  %v44_v62 = vld [vmem:[%s1723_s2 + $0x18] sm:$0xff]  ;;  %v45_v2 = vld [vmem:[%s1723_s2 + $0x20] sm:$0xff]  ;;  %v46_v5 = vld [vmem:[%s1723_s2 + $0x28] sm:$0xff] }
   0xc   :  { %1216 = vmatprep.subr.mxu1 %v1319_v0  ;;  %1213 = vmatprep.mubr.msk.f32.mxu0 %vm1320_vm0, %v1319_v0  ;;  %v1012_v60 = vadd.f32 %v1011_v58, %v1010_v57  ;;  %v1015_v1 = vsel %vm1009_vm2, %v44_v62, 0.0  ;;  %v1017_v4 = vsel %vm1009_vm2, %v45_v2, 0.0  ;;  %v1019_v7 = vsel %vm1009_vm2, %v46_v5, 0.0  ;;  %v47_v8 = vld [vmem:[%s1723_s2 + $0x30] sm:$0xff]  ;;  %v48_v11 = vld [vmem:[%s1723_s2 + $0x38] sm:$0xff] }
   0xd   :  { %1217 = vmatpush3.msra.mxu1 %v87_v28  ;;  %1218 = vmatprep.mubr.msk.f32.mxu1 %vm1320_vm0, %v1319_v0  ;;  %v1021_v10 = vsel %vm1009_vm2, %v47_v8, 0.0  ;;  %v1023_v13 = vsel %vm1009_vm2, %v48_v11, 0.0  ;;  %v1587_v43 = vld [vmem:[%s1724_s7] sm:$0x1]  ;;  %v1160_v57 = vld [vmem:[%s1725_s4 + $0x2] ss:$0 sm:$0xff] }
   0xe   :  { %1214 = vmatmul.mubr.msk.f32.vlgmr.msra.gmra.mrb[2].mxu0 %vm92_vm1, %v35_v31  ;;  %1221 = vmatprep.subr.mxu0 %v1319_v0  ;;  %v1014_v63 = vadd.f32 %v1013_v61, %v1012_v60 }
   0xf   :  { %1219 = vmatmul.mubr.msk.f32.vlgmr.msra.gmra.mrb[2].mxu1 %vm92_vm1, %v36_v32  ;;  %1222 = vmatpush3.msra.mxu0 %v88_v33 }
  0x10   :  { %1226 = vmatprep.subr.mxu1 %v1319_v0  ;;  %1223 = vmatprep.mubr.msk.f32.mxu0 %vm1320_vm0, %v1319_v0  ;;  %v1016_v3 = vadd.f32 %v1015_v1, %v1014_v63 }
  0x11   :  { %1227 = vmatpush3.msra.mxu1 %v89_v35  ;;  %1228 = vmatprep.mubr.msk.f32.mxu1 %vm1320_vm0, %v1319_v0 }
  0x12   :  { %1224 = vmatmul.mubr.msk.f32.vlgmr.msra.gmra.mrb[4].mxu0 %vm92_vm1, %v37_v37  ;;  %1231 = vmatprep.subr.mxu0 %v1319_v0  ;;  %v1018_v6 = vadd.f32 %v1017_v4, %v1016_v3 }
  0x13   :  { %1229 = vmatmul.mubr.msk.f32.vlgmr.msra.gmra.mrb[4].mxu1 %vm92_vm1, %v38_v38  ;;  %1232 = vmatpush3.msra.mxu0 %v90_v39 }
  0x14   :  { %1236 = vmatprep.subr.mxu1 %v1319_v0  ;;  %1233 = vmatprep.mubr.msk.f32.mxu0 %vm1320_vm0, %v1319_v0  ;;  %v1020_v9 = vadd.f32 %v1019_v7, %v1018_v6 }
  0x15   :  { %1237 = vmatpush3.msra.mxu1 %v91_v42  ;;  %1238 = vmatprep.mubr.msk.f32.mxu1 %vm1320_vm0, %v1319_v0 }
  0x16   :  { %1234 = vmatmul.mubr.msk.f32.vlgmr.msra.gmra.mrb[6].mxu0 %vm92_vm1, %v39_v47  ;;  %1282 = vmatprep.subr.bf16.mxu1 %v1281_v48  ;;  %v1022_v12 = vadd.f32 %v1021_v10, %v1020_v9 }
  0x17   :  { %1239 = vmatmul.mubr.msk.f32.vlgmr.msra.gmra.mrb[6].mxu1 %vm92_vm1, %v40_v51  ;;  %1290 = vmatprep.subr.bf16.mxu0 %v1289_v52 }
  0x18   :  { %1284 = vmatpush3.bf16.msra.mxu1 %v1281_v48  ;;  %1292 = vmatpush3.bf16.msra.mxu0 %v1289_v52  ;;  %v1024_v14 = vadd.f32 %v1023_v13, %v1022_v12 }
  0x19   :  { %1286 = vmatprep.subr.bf16.mxu1 %v1285_v53  ;;  %1294 = vmatprep.subr.bf16.mxu0 %v1293_v54 }
  0x1a   :  { %1249 = vmatprep.mubr.msk.f32.mxu1 %vm677_vm3, %v84_v18  ;;  %1025 = vadd.xlane.f32.xlu0 %v1024_v14 }
  0x1b   :  { %1312 = vset.pattern.permute.xlu1 %v1321_v15  ;;  %1311 = vset.pattern.permute.xlu0 %v1321_v15 }
  0x1c   :  { %1288 = vmatpush3.bf16.msra.mxu1 %v1285_v53  ;;  %1296 = vmatpush3.bf16.msra.mxu0 %v1293_v54 }
  0x1d   :  { %968 = vperm.xlu1 %1312, %v42_v56  }
  0x1f   :  { %1250 = vmatmul.mubr.msk.f32.vlgmr.msra.gmra.mrb[8].mxu1 %vm677_vm3, %v85_v23 }
  0x20   :  { %1252 = vmatprep.mubr.msk.f32.mxu1 %vm677_vm3, %v86_v27 }
  0x21   :  { %973 = vperm.xlu1 %1312, %v43_v59  }
  0x23   :  { %1253 = vmatmul.mubr.msk.f32.gmra.mrb[10].mxu1 %vm677_vm3, %v87_v28 }
  0x24   :  { %1255 = vmatprep.mubr.msk.f32.mxu1 %vm677_vm3, %v88_v33 }
  0x25   :  { %978 = vperm.xlu1 %1312, %v44_v62  }
  0x27   :  { %1256 = vmatmul.mubr.msk.f32.gmra.mrb[12].mxu1 %vm677_vm3, %v89_v35 }
  0x28   :  { %1258 = vmatprep.mubr.msk.f32.mxu1 %vm677_vm3, %v90_v39 }
  0x29   :  { %983 = vperm.xlu1 %1312, %v45_v2  }
  0x2b   :  { %1259 = vmatmul.mubr.msk.f32.gmra.mrb[14].mxu1 %vm677_vm3, %v91_v42 }
  0x2d   :  { %988 = vperm.xlu1 %1312, %v46_v5  }
  0x30   :  { %963 = vperm.xlu0 %1311, %v41_v55  }
  0x31   :  { %993 = vperm.xlu1 %1312, %v47_v8  }
  0x35   :  { %998 = vperm.xlu1 %1312, %v48_v11  }
  0x9c   :  { %v1598_v53 = vpop.permute.xlu1 %968 }
  0xa0   :  { %v1600_v54 = vpop.permute.xlu1 %973 }
  0xa4   :  { %v1602_v55 = vpop.permute.xlu1 %978 }
  0xa7   :  { %v1026_v32 = vpop.xlane.xlu0 %1025 }
  0xa8   :  { %v1027_v33 = vrot.slane %v1026_v32, 4  ;;  %v1604_v56 = vpop.permute.xlu1 %983 }
  0xaa   :  { %v1028_v34 = vadd.f32 %v1027_v33, %v1026_v32 }
  0xac   :  { %v1029_v35 = vrot.slane %v1028_v34, 2  ;;  %v1615_v3 = vpop.permute.xlu1 %988 }
  0xae   :  { %v1030_v36 = vadd.f32 %v1029_v35, %v1028_v34 }
  0xaf   :  { %v1611_v63 = vpop.permute.xlu0 %963 }
  0xb0   :  { %v1031_v37 = vrot.slane %v1030_v36, 1 }
  0xb2   :  { %v1032_v38 = vadd.f32 %v1031_v37, %v1030_v36 }
  0xb4   :  { %1305 = vpush %v1032_v38 }
  0xdd   :  { %v162_v16 = vpop.f32.mrb[0].mxu0 }
  0xde   :  { %v1205_v17 = vpop.f32.mrb[1].mxu0  ;;  %v235_v18 = vpop.f32.mrb[0].mxu1  ;;  %1269 = vmatprep.mubr.msk.f32.mxu0 %vm677_vm3, %v162_v16 }
  0xdf   :  { %v1210_v19 = vpop.f32.mrb[1].mxu1  ;;  %1270 = vmatmul.mubr.msk.f32.vlgmr.msra.gmra.mrb[8].mxu0 %vm677_vm3, %v235_v18 }
  0xe1   :  { %v308_v20 = vpop.f32.mrb[2].mxu0 }
  0xe2   :  { %v1215_v21 = vpop.f32.mrb[3].mxu0  ;;  %v381_v22 = vpop.f32.mrb[2].mxu1  ;;  %1272 = vmatprep.mubr.msk.f32.mxu0 %vm677_vm3, %v308_v20 }
  0xe3   :  { %v1220_v23 = vpop.f32.mrb[3].mxu1  ;;  %1273 = vmatmul.mubr.msk.f32.gmra.mrb[10].mxu0 %vm677_vm3, %v381_v22  ;;  %v1651_v20 = vpop.permute.xlu1 %993 }
  0xe5   :  { %v454_v24 = vpop.f32.mrb[4].mxu0  ;;  %s1582_s17 = spop %1305 }
  0xe6   :  { %v1225_v25 = vpop.f32.mrb[5].mxu0  ;;  %v527_v26 = vpop.f32.mrb[4].mxu1  ;;  %1275 = vmatprep.mubr.msk.f32.mxu0 %vm677_vm3, %v454_v24  ;;  %v1107_v44 = vstv %s1582_s17  ;;  %s1055_s13 = smax.f32 %s1322_s12, %s1582_s17 }
  0xe7   :  { %v1230_v27 = vpop.f32.mrb[5].mxu1  ;;  %1276 = vmatmul.mubr.msk.f32.gmra.mrb[12].mxu0 %vm677_vm3, %v527_v26  ;;  %v1108_v45 = vadd.f32 %v1107_v44, %v1587_v43  ;;  %v1113_v0 = vmul.f32 %v1107_v44, %v1587_v43  ;;  %v999_v36 = vpop.permute.xlu1 %998 }
  0xe9   :  { %v600_v28 = vpop.f32.mrb[6].mxu0  ;;  %v1114_v47 = vmax.f32 %v1108_v45, 1.0  ;;  %1122 = vst.msk [vmem:[%s1724_s7] sm:$0x1] %vm1121_vm4, %v1108_v45 }
  0xea   :  { %v1235_v29 = vpop.f32.mrb[7].mxu0  ;;  %v673_v30 = vpop.f32.mrb[6].mxu1  ;;  %1278 = vmatprep.mubr.msk.f32.mxu0 %vm677_vm3, %v600_v28 }
  0xeb   :  { %v1240_v31 = vpop.f32.mrb[7].mxu1  ;;  %1279 = vmatmul.mubr.msk.f32.gmra.mrb[14].mxu0 %vm677_vm3, %v673_v30  ;;  %1313 = vrcp.f32 %v1114_v47 }
  0xf2   :  { %v1251_v39 = vpop.f32.mrb[8].mxu1 }
  0xf3   :  { %v768_v40 = vpop.f32.mrb[9].mxu1 }
  0xf5   :  { %v1314_v51 = vpop.eup %1313 }
  0xf6   :  { %v1254_v41 = vpop.f32.mrb[10].mxu1  ;;  %v1596_v52 = vmul.f32 %v1314_v51, %v1113_v0 }
  0xf7   :  { %v778_v42 = vpop.f32.mrb[11].mxu1 }
  0xfa   :  { %v1257_v46 = vpop.f32.mrb[12].mxu1 }
  0xfb   :  { %v788_v48 = vpop.f32.mrb[13].mxu1 }
  0xfe   :  { %v1260_v49 = vpop.f32.mrb[14].mxu1 }
  0xff   :  { %v798_v50 = vpop.f32.mrb[15].mxu1 }
 0x1b2   :  { %v1271_v58 = vpop.f32.mrb[8].mxu0 }
 0x1b3   :  { %v903_v59 = vadd.f32 %v1271_v58, %v1251_v39  ;;  %v897_v60 = vpop.f32.mrb[9].mxu0  ;;  %v1105_v58 = vld [vmem:[%s1724_s7 + $0x1] sm:$0x1] }
 0x1b4   :  { %v898_v61 = vadd.f32 %v897_v60, %v768_v40 }
 0x1b5   :  { %v1609_v62 = vadd.f32 %v1160_v57, %v903_v59 }
 0x1b6   :  { %v1613_v1 = vadd.f32 %v1160_v57, %v898_v61  ;;  %v1274_v2 = vpop.f32.mrb[10].mxu0 }
 0x1b7   :  { %949 = vst.msk [vmem:[%s1726_s6 + $0x8] sm:$0xff] %vm677_vm3, %v1609_v62  ;;  %v913_v4 = vadd.f32 %v1274_v2, %v1254_v41  ;;  %v1002_v5 = vmul.f32 %v1598_v53, %v1609_v62  ;;  %v907_v6 = vpop.f32.mrb[11].mxu0 }
 0x1b8   :  { %948 = vst.msk [vmem:[%s1726_s6] sm:$0xff] %vm677_vm3, %v1613_v1  ;;  %v1001_v7 = vmul.f32 %v1611_v63, %v1613_v1  ;;  %v908_v8 = vadd.f32 %v907_v6, %v778_v42 }
 0x1b9   :  { %v1631_v9 = vadd.f32 %v1160_v57, %v913_v4  ;;  %v1035_v10 = vsel %vm677_vm3, %v1002_v5, 0.0 }
 0x1ba   :  { %v1034_v11 = vsel %vm677_vm3, %v1001_v7, 0.0  ;;  %v1635_v12 = vadd.f32 %v1160_v57, %v908_v8  ;;  %v1277_v13 = vpop.f32.mrb[12].mxu0 }
 0x1bb   :  { %951 = vst.msk [vmem:[%s1726_s6 + $0x18] sm:$0xff] %vm677_vm3, %v1631_v9  ;;  %v1036_v14 = vadd.f32 %v1035_v10, %v1034_v11  ;;  %v923_v15 = vadd.f32 %v1277_v13, %v1257_v46  ;;  %v917_v16 = vpop.f32.mrb[13].mxu0  ;;  %v1004_v17 = vmul.f32 %v1602_v55, %v1631_v9  ;;  %v1056_v46 = vstv %s1055_s13 }
 0x1bc   :  { %950 = vst.msk [vmem:[%s1726_s6 + $0x10] sm:$0xff] %vm677_vm3, %v1635_v12  ;;  %v1003_v18 = vmul.f32 %v1600_v54, %v1635_v12  ;;  %v918_v19 = vadd.f32 %v917_v16, %v788_v48  ;;  %v1109_v48 = vmax.f32 %v1587_v43, 1.0  ;;  %1315 = vrcp.f32 %v1056_v46 }
 0x1bd   :  { %v1653_v21 = vadd.f32 %v1160_v57, %v923_v15  ;;  %v1039_v28 = vsel %vm677_vm3, %v1004_v17, 0.0 }
 0x1be   :  { %v1037_v22 = vsel %vm677_vm3, %v1003_v18, 0.0  ;;  %v944_v23 = vadd.f32 %v1160_v57, %v918_v19  ;;  %v1280_v24 = vpop.f32.mrb[14].mxu0  ;;  %1317 = vrcp.f32 %v1109_v48 }
 0x1bf   :  { %v1038_v25 = vadd.f32 %v1037_v22, %v1036_v14  ;;  %953 = vst.msk [vmem:[%s1726_s6 + $0x28] sm:$0xff] %vm677_vm3, %v1653_v21  ;;  %v933_v26 = vadd.f32 %v1280_v24, %v1260_v49  ;;  %v927_v27 = vpop.f32.mrb[15].mxu0  ;;  %v1006_v29 = vmul.f32 %v1615_v3, %v1653_v21 }
 0x1c0   :  { %952 = vst.msk [vmem:[%s1726_s6 + $0x20] sm:$0xff] %vm677_vm3, %v944_v23  ;;  %v1005_v30 = vmul.f32 %v1604_v56, %v944_v23  ;;  %v928_v31 = vadd.f32 %v927_v27, %v798_v50 }
 0x1c1   :  { %v1040_v32 = vadd.f32 %v1039_v28, %v1038_v25  ;;  %v947_v33 = vadd.f32 %v1160_v57, %v933_v26  ;;  %v1043_v38 = vsel %vm677_vm3, %v1006_v29, 0.0 }
 0x1c2   :  { %v1041_v34 = vsel %vm677_vm3, %v1005_v30, 0.0  ;;  %v946_v35 = vadd.f32 %v1160_v57, %v928_v31 }
 0x1c3   :  { %v1042_v37 = vadd.f32 %v1041_v34, %v1040_v32  ;;  %955 = vst.msk [vmem:[%s1726_s6 + $0x38] sm:$0xff] %vm677_vm3, %v947_v33  ;;  %v1008_v39 = vmul.f32 %v999_v36, %v947_v33 }
 0x1c4   :  { %954 = vst.msk [vmem:[%s1726_s6 + $0x30] sm:$0xff] %vm677_vm3, %v946_v35  ;;  %v1007_v40 = vmul.f32 %v1651_v20, %v946_v35 }
 0x1c5   :  { %v1044_v41 = vadd.f32 %v1043_v38, %v1042_v37  ;;  %v1047_v45 = vsel %vm677_vm3, %v1008_v39, 0.0 }
 0x1c6   :  { %v1045_v42 = vsel %vm677_vm3, %v1007_v40, 0.0  ;;  %v1316_v60 = vpop.eup %1315 }
 0x1c7   :  { %v1046_v44 = vadd.f32 %v1045_v42, %v1044_v41 }
 0x1c8   :  { %v1318_v4 = vpop.eup %1317 }
 0x1c9   :  { %v1048_v47 = vadd.f32 %v1047_v45, %v1046_v44  ;;  %v1111_v15 = vmul.f32 %v1318_v4, %v1105_v58 }
 0x1cb   :  { %v1049_v0 = vrot.slane %v1048_v47, 4 }
 0x1cd   :  { %v1050_v49 = vadd.f32 %v1049_v0, %v1048_v47 }
 0x1cf   :  { %v1051_v50 = vrot.slane %v1050_v49, 2 }
 0x1d1   :  { %v1052_v51 = vadd.f32 %v1051_v50, %v1050_v49 }
 0x1d3   :  { %v1053_v57 = vrot.slane %v1052_v51, 1 }
 0x1d5   :  { %v1054_v59 = vadd.f32 %v1053_v57, %v1052_v51 }
 0x1d7   :  { %v1058_v61 = vmul.f32 %v1316_v60, %v1054_v59  ;;  %v1123_v2 = vadd.f32 %v1105_v58, %v1054_v59 }
 0x1d9   :  { %v1059_v5 = vsub.f32 %v1613_v1, %v1058_v61  ;;  %v1060_v43 = vsub.f32 %v1609_v62, %v1058_v61  ;;  %v1061_v6 = vsub.f32 %v1635_v12, %v1058_v61  ;;  %v1062_v7 = vsub.f32 %v1631_v9, %v1058_v61  ;;  %1124 = vst.msk [vmem:[%s1724_s7 + $0x1] sm:$0x1] %vm1121_vm4, %v1123_v2 }
 0x1da   :  { %v1063_v8 = vsub.f32 %v944_v23, %v1058_v61  ;;  %v1064_v10 = vsub.f32 %v1653_v21, %v1058_v61  ;;  %v1065_v11 = vsub.f32 %v946_v35, %v1058_v61  ;;  %v1066_v13 = vsub.f32 %v947_v33, %v1058_v61 }
 0x1db   :  { %v1067_v14 = vmul.f32 %v1059_v5, %v1611_v63  ;;  %v1068_v1 = vmul.f32 %v1060_v43, %v1598_v53  ;;  %v1069_v62 = vmul.f32 %v1061_v6, %v1600_v54  ;;  %v1070_v12 = vmul.f32 %v1062_v7, %v1602_v55 }
 0x1dc   :  { %v1071_v9 = vmul.f32 %v1063_v8, %v1604_v56  ;;  %v1072_v19 = vmul.f32 %v1064_v10, %v1615_v3  ;;  %v1073_v53 = vmul.f32 %v1065_v11, %v1651_v20  ;;  %v1112_v55 = vsub.f32 %v1058_v61, %v1111_v15 }
 0x1dd   :  { %v1075_v16 = vmul.f32 %v1067_v14, %v1067_v14  ;;  %v1076_v17 = vmul.f32 %v1068_v1, %v1068_v1  ;;  %v1077_v18 = vmul.f32 %v1069_v62, %v1069_v62  ;;  %v1078_v22 = vmul.f32 %v1070_v12, %v1070_v12 }
 0x1de   :  { %v1079_v24 = vmul.f32 %v1071_v9, %v1071_v9  ;;  %v1074_v26 = vmul.f32 %v1066_v13, %v999_v36  ;;  %v1080_v56 = vmul.f32 %v1072_v19, %v1072_v19  ;;  %v1118_v28 = vmul.f32 %v1112_v55, %v1112_v55 }
 0x1df   :  { %v1083_v21 = vsel %vm677_vm3, %v1075_v16, 0.0  ;;  %v1084_v23 = vsel %vm677_vm3, %v1076_v17, 0.0  ;;  %v1086_v54 = vsel %vm677_vm3, %v1077_v18, 0.0  ;;  %v1088_v27 = vsel %vm677_vm3, %v1078_v22, 0.0 }
 0x1e0   :  { %v1085_v63 = vadd.f32 %v1084_v23, %v1083_v21  ;;  %v1081_v3 = vmul.f32 %v1073_v53, %v1073_v53  ;;  %v1090_v30 = vsel %vm677_vm3, %v1079_v24, 0.0  ;;  %v1119_v31 = vmul.f32 %v1118_v28, %v1596_v52  ;;  %v1106_v52 = vld [vmem:[%s1724_s7 + $0x2] sm:$0x1] }
 0x1e1   :  { %v1082_v33 = vmul.f32 %v1074_v26, %v1074_v26  ;;  %v1092_v20 = vsel %vm677_vm3, %v1080_v56, 0.0 }
 0x1e2   :  { %v1087_v25 = vadd.f32 %v1086_v54, %v1085_v63  ;;  %v1094_v35 = vsel %vm677_vm3, %v1081_v3, 0.0 }
 0x1e3   :  { %v1096_v36 = vsel %vm677_vm3, %v1082_v33, 0.0 }
 0x1e4   :  { %v1089_v29 = vadd.f32 %v1088_v27, %v1087_v25 }
 0x1e6   :  { %v1091_v32 = vadd.f32 %v1090_v30, %v1089_v29 }
 0x1e8   :  { %v1093_v34 = vadd.f32 %v1092_v20, %v1091_v32 }
 0x1ea   :  { %v1095_v37 = vadd.f32 %v1094_v35, %v1093_v34 }
 0x1ec   :  { %v1097_v38 = vadd.f32 %v1096_v36, %v1095_v37 }
 0x1ee   :  { %v1098_v39 = vrot.slane %v1097_v38, 4 }
 0x1f0   :  { %v1099_v40 = vadd.f32 %v1098_v39, %v1097_v38 }
 0x1f2   :  { %v1100_v41 = vrot.slane %v1099_v40, 2 }
 0x1f4   :  { %v1101_v42 = vadd.f32 %v1100_v41, %v1099_v40 }
 0x1f6   :  { %v1102_v44 = vrot.slane %v1101_v42, 1 }
 0x1f8   :  { %v1103_v45 = vadd.f32 %v1102_v44, %v1101_v42 }
 0x1fa   :  { %v1117_v46 = vadd.f32 %v1106_v52, %v1103_v45 }
 0x1fc   :  { %v1120_v47 = vadd.f32 %v1119_v31, %v1117_v46 }
 0x1fe   :  { %1125 = vst.msk [vmem:[%s1724_s7 + $0x2] sm:$0x1] %vm1121_vm4, %v1120_v47 }

// kernel: mnist_sp_net_forward.5
= control target key start
LH: loop header
LB: loop body
LE: loop exit
PB: predicated region body
PF: predicated region fallthrough
CT: control target
= control target key end

     0   :  { %vm183_vm0 = vcmask 7168   ;;  %v564_v0 = vmov 0   ;;  %s734_s1 = inlined_call_operand.vmem [shape: f32[8,8,1], index: 1, kind: input, shape index: {}]   ;;  %s735_s3 = inlined_call_operand.vmem [shape: f32[40,64], index: 3, kind: input, shape index: {}]   ;;  %s736_s4 = inlined_call_operand.vmem [shape: f32[72,128], index: 4, kind: input, shape index: {}]   ;;  %s737_s2 = inlined_call_operand.vmem [shape: f32[8,32], index: 2, kind: input, shape index: {}]   ;;  %s738_s0 = inlined_call_operand.vmem [shape: f32[8,8,32], index: 0, kind: input, shape index: {}]   ;;  %s739_s5 = inlined_call_operand.vmem [shape: f32[8,128], index: 5, kind: output, shape index: {}]  }
   0x1   :  { %563 = vset.pattern.permute.xlu1 %v564_v0  ;;  %562 = vset.pattern.permute.xlu0 %v564_v0  ;;  %v30_v1 = vld [vmem:[%s734_s1 + $0x10] sm:$0xff]  ;;  %v28_v2 = vld [vmem:[%s734_s1] sm:$0xff]  ;;  %v31_v3 = vld [vmem:[%s734_s1 + $0x18] sm:$0xff] }
   0x2   :  { %vm72_vm1 = vcmp.gt.f32.partialorder %v30_v1, 0.0  ;;  %v198_v4 = vsel %vm183_vm0, %v30_v1, 0.0  ;;  %vm70_vm2 = vcmp.gt.f32.partialorder %v28_v2, 0.0  ;;  %v184_v5 = vsel %vm183_vm0, %v28_v2, 0.0  ;;  %v29_v6 = vld [vmem:[%s734_s1 + $0x8] sm:$0xff]  ;;  %v32_v18 = vld [vmem:[%s734_s1 + $0x20] sm:$0xff] }
   0x3   :  { %v80_v7 = vsel %vm72_vm1, 1, %v564_v0  ;;  %v199_v8 = vrot.slane %v198_v4, 4  ;;  %v78_v9 = vsel %vm70_vm2, 1, %v564_v0  ;;  %v185_v10 = vrot.slane %v184_v5, 4  ;;  %v33_v11 = vld [vmem:[%s734_s1 + $0x28] sm:$0xff]  ;;  %v35_v22 = vld [vmem:[%s734_s1 + $0x38] sm:$0xff] }
   0x4   :  { %93 = vperm.xlu1 %563, %v80_v7   ;;  %87 = vperm.xlu0 %562, %v78_v9   ;;  %vm73_vm3 = vcmp.gt.f32.partialorder %v31_v3, 0.0  ;;  %v205_v12 = vsel %vm183_vm0, %v31_v3, 0.0  ;;  %vm71_vm4 = vcmp.gt.f32.partialorder %v29_v6, 0.0  ;;  %v191_v13 = vsel %vm183_vm0, %v29_v6, 0.0  ;;  %v34_v27 = vld [vmem:[%s734_s1 + $0x30] sm:$0xff] }
   0x5   :  { %v200_v14 = vadd.f32 %v199_v8, %v198_v4  ;;  %v186_v15 = vadd.f32 %v185_v10, %v184_v5  ;;  %v81_v16 = vsel %vm73_vm3, 1, %v564_v0  ;;  %v206_v17 = vrot.slane %v205_v12, 4 }
   0x6   :  { %v79_v19 = vsel %vm71_vm4, 1, %v564_v0  ;;  %v192_v20 = vrot.slane %v191_v13, 4  ;;  %vm75_vm5 = vcmp.gt.f32.partialorder %v33_v11, 0.0  ;;  %v219_v21 = vsel %vm183_vm0, %v33_v11, 0.0 }
   0x7   :  { %v201_v23 = vrot.slane %v200_v14, 2  ;;  %v187_v24 = vrot.slane %v186_v15, 2  ;;  %v207_v25 = vadd.f32 %v206_v17, %v205_v12  ;;  %v83_v26 = vsel %vm75_vm5, 1, %v564_v0  ;;  %v296_v17 = vld [vmem:[%s735_s3] sm:$0xff] }
   0x8   :  { %96 = vperm.xlu1 %563, %v81_v16   ;;  %v193_v28 = vadd.f32 %v192_v20, %v191_v13  ;;  %90 = vperm.xlu0 %562, %v79_v19   ;;  %v220_v29 = vrot.slane %v219_v21, 4  ;;  %vm74_vm6 = vcmp.gt.f32.partialorder %v32_v18, 0.0  ;;  %v212_v30 = vsel %vm183_vm0, %v32_v18, 0.0  ;;  %v297_v18 = vld [vmem:[%s735_s3 + $0x8] sm:$0xff] }
   0x9   :  { %v82_v31 = vsel %vm74_vm6, 1, %v564_v0  ;;  %v213_v32 = vrot.slane %v212_v30, 4  ;;  %vm77_vm7 = vcmp.gt.f32.partialorder %v35_v22, 0.0  ;;  %v233_v33 = vsel %vm183_vm0, %v35_v22, 0.0  ;;  %v298_v22 = vld [vmem:[%s735_s3 + $0x10] sm:$0xff] }
   0xa   :  { %v221_v34 = vadd.f32 %v220_v29, %v219_v21  ;;  %v85_v35 = vsel %vm77_vm7, 1, %v564_v0  ;;  %v234_v36 = vrot.slane %v233_v33, 4  ;;  %vm76_vm8 = vcmp.gt.f32.partialorder %v34_v27, 0.0  ;;  %v304_v29 = vld [vmem:[%s736_s4 + $0x18] sm:$0xff] }
   0xb   :  { %v214_v37 = vadd.f32 %v213_v32, %v212_v30  ;;  %v84_v38 = vsel %vm76_vm8, 1, %v564_v0  ;;  %v226_v39 = vsel %vm183_vm0, %v34_v27, 0.0  ;;  %v194_v40 = vrot.slane %v193_v28, 2  ;;  %v303_v27 = vld [vmem:[%s736_s4 + $0x10] sm:$0xff]  ;;  %v306_v32 = vld [vmem:[%s736_s4 + $0x28] sm:$0xff] }
   0xc   :  { %102 = vperm.xlu1 %563, %v83_v26   ;;  %99 = vperm.xlu0 %562, %v82_v31   ;;  %v235_v41 = vadd.f32 %v234_v36, %v233_v33  ;;  %v227_v42 = vrot.slane %v226_v39, 4  ;;  %v188_v43 = vadd.f32 %v187_v24, %v186_v15  ;;  %v208_v44 = vrot.slane %v207_v25, 2  ;;  %v302_v26 = vld [vmem:[%s736_s4 + $0x8] sm:$0xff]  ;;  %v305_v31 = vld [vmem:[%s736_s4 + $0x20] sm:$0xff] }
   0xd   :  { %v195_v45 = vadd.f32 %v194_v40, %v193_v28  ;;  %v202_v46 = vadd.f32 %v201_v23, %v200_v14  ;;  %v222_v47 = vrot.slane %v221_v34, 2  ;;  %v215_v48 = vrot.slane %v214_v37, 2  ;;  %v299_v23 = vld [vmem:[%s735_s3 + $0x18] sm:$0xff]  ;;  %v20_v36 = vld [vmem:[%s738_s0] sm:$0xff] }
   0xe   :  { %v228_v49 = vadd.f32 %v227_v42, %v226_v39  ;;  %v189_v50 = vrot.slane %v188_v43, 1  ;;  %v209_v51 = vadd.f32 %v208_v44, %v207_v25  ;;  %v236_v52 = vrot.slane %v235_v41, 2  ;;  %v493_v39 = vld [vmem:[%s737_s2 + $0x1] ss:$0 sm:$0xff]  ;;  %v23_v40 = vld [vmem:[%s738_s0 + $0x18] sm:$0xff]  ;;  %v25_v42 = vld [vmem:[%s738_s0 + $0x28] sm:$0xff] }
   0xf   :  { %v196_v53 = vrot.slane %v195_v45, 1  ;;  %v203_v54 = vrot.slane %v202_v46, 1  ;;  %v223_v55 = vadd.f32 %v222_v47, %v221_v34  ;;  %v216_v56 = vadd.f32 %v215_v48, %v214_v37  ;;  %v492_v34 = vld [vmem:[%s737_s2] ss:$0 sm:$0xff] }
  0x10   :  { %108 = vperm.xlu1 %563, %v85_v35   ;;  %105 = vperm.xlu0 %562, %v84_v38   ;;  %v190_v57 = vadd.f32 %v189_v50, %v188_v43  ;;  %v210_v58 = vrot.slane %v209_v51, 1  ;;  %v237_v59 = vadd.f32 %v236_v52, %v235_v41  ;;  %v229_v60 = vrot.slane %v228_v49, 2  ;;  %v22_v35 = vld [vmem:[%s738_s0 + $0x10] sm:$0xff]  ;;  %v21_v41 = vld [vmem:[%s738_s0 + $0x8] sm:$0xff]  ;;  %v24_v43 = vld [vmem:[%s738_s0 + $0x20] sm:$0xff] }
  0x11   :  { %v197_v61 = vadd.f32 %v196_v53, %v195_v45  ;;  %v204_v62 = vadd.f32 %v203_v54, %v202_v46  ;;  %v224_v63 = vrot.slane %v223_v55, 1  ;;  %v217_v1 = vrot.slane %v216_v56, 1  ;;  %v27_v54 = vld [vmem:[%s738_s0 + $0x38] sm:$0xff] }
  0x12   :  { %vm240_vm9 = vcmp.gt.f32.partialorder %v190_v57, 0.0  ;;  %v211_v2 = vadd.f32 %v210_v58, %v209_v51  ;;  %v238_v3 = vrot.slane %v237_v59, 1  ;;  %v230_v4 = vadd.f32 %v229_v60, %v228_v49 }
  0x13   :  { %vm241_vm10 = vcmp.gt.f32.partialorder %v197_v61, 0.0  ;;  %v248_v5 = vsel %vm240_vm9, 1, %v564_v0  ;;  %vm242_vm11 = vcmp.gt.f32.partialorder %v204_v62, 0.0  ;;  %v225_v6 = vadd.f32 %v224_v63, %v223_v55  ;;  %v26_v55 = vld [vmem:[%s738_s0 + $0x30] sm:$0xff] }
  0x14   :  { %v249_v7 = vsel %vm241_vm10, 1, %v564_v0  ;;  %257 = vperm.xlu0 %562, %v248_v5   ;;  %vm243_vm12 = vcmp.gt.f32.partialorder %v211_v2, 0.0  ;;  %v218_v8 = vadd.f32 %v217_v1, %v216_v56  ;;  %v250_v9 = vsel %vm242_vm11, 1, %v564_v0 }
  0x15   :  { %260 = vperm.xlu1 %563, %v249_v7   ;;  %v231_v10 = vrot.slane %v230_v4, 1  ;;  %v251_v11 = vsel %vm243_vm12, 1, %v564_v0  ;;  %vm245_vm14 = vcmp.gt.f32.partialorder %v225_v6, 0.0  ;;  %v239_v12 = vadd.f32 %v238_v3, %v237_v59 }
  0x16   :  { %vm244_vm13 = vcmp.gt.f32.partialorder %v218_v8, 0.0  ;;  %v253_v15 = vsel %vm245_vm14, 1, %v564_v0  ;;  %v541_v20 = vpack.c.bf16 %v297_v18, %v296_v17  ;;  %v565_v21 = vmov 0.0|0.0  }
  0x17   :  { %v232_v13 = vadd.f32 %v231_v10, %v230_v4  ;;  %v252_v14 = vsel %vm244_vm13, 1, %v564_v0  ;;  %vm247_vm0 = vcmp.gt.f32.partialorder %v239_v12, 0.0  ;;  %540 = vmatprep.subr.bf16.mxu0 %v565_v21  ;;  %546 = vmatprep.subr.bf16.mxu1 %v565_v21  ;;  %v544_v24 = vpack.c.bf16 %v299_v23, %v298_v22 }
  0x18   :  { %263 = vperm.xlu0 %562, %v250_v9   ;;  %v255_v19 = vsel %vm247_vm0, 1, %v564_v0  ;;  %542 = vmatpush3.bf16.msra.mxu0 %v541_v20  ;;  %vm566_vm1 = vmmov 0   ;;  %v567_v25 = vmov 0.0   ;;  %v550_v30 = vpack.c.bf16 %v304_v29, %v303_v27 }
  0x19   :  { %266 = vperm.xlu1 %563, %v251_v11   ;;  %vm246_vm15 = vcmp.gt.f32.partialorder %v232_v13, 0.0  ;;  %543 = vmatprep.subr.bf16.mxu0 %v565_v21  ;;  %v553_v33 = vpack.c.bf16 %v306_v32, %v305_v31  ;;  %v44_v37 = vmul.f32 %v492_v34, %v22_v35  ;;  %v42_v38 = vmul.f32 %v492_v34, %v20_v36 }
  0x1a   :  { %v254_v16 = vsel %vm246_vm15, 1, %v564_v0  ;;  %518 = vmatprep.mubr.msk.f32.mxu0 %vm566_vm1, %v567_v25  ;;  %537 = vmatprep.mubr.msk.f32.mxu1 %vm566_vm1, %v567_v25  ;;  %v301_v0 = vld [vmem:[%s736_s4] sm:$0xff]  ;;  %v45_v46 = vmul.f32 %v492_v34, %v23_v40  ;;  %v43_v47 = vmul.f32 %v492_v34, %v21_v41  ;;  %v47_v48 = vmul.f32 %v492_v34, %v25_v42 }
  0x1b   :  { %v547_v28 = vpack.c.bf16 %v302_v26, %v301_v0  ;;  %v56_v44 = vadd.f32 %v493_v39, %v44_v37  ;;  %v54_v45 = vadd.f32 %v493_v39, %v42_v38  ;;  %v46_v49 = vmul.f32 %v492_v34, %v24_v43 }
  0x1c   :  { %269 = vperm.xlu0 %562, %v252_v14   ;;  %545 = vmatpush3.bf16.msra.mxu0 %v544_v24  ;;  %v57_v52 = vadd.f32 %v493_v39, %v45_v46  ;;  %v55_v53 = vadd.f32 %v493_v39, %v43_v47  ;;  %vm126_vm2 = vcmask 261120   ;;  %v59_v58 = vadd.f32 %v493_v39, %v47_v48 }
  0x1d   :  { %272 = vperm.xlu1 %563, %v253_v15   ;;  %548 = vmatpush3.bf16.msra.mxu1 %v547_v28  ;;  %v64_v50 = vmax.f32 %v56_v44, 0.0  ;;  %v62_v51 = vmax.f32 %v54_v45, 0.0  ;;  %v58_v59 = vadd.f32 %v493_v39, %v46_v49  ;;  %v49_v60 = vmul.f32 %v492_v34, %v27_v54 }
  0x1e   :  { %549 = vmatprep.subr.bf16.mxu1 %v565_v21  ;;  %v48_v61 = vmul.f32 %v492_v34, %v26_v55  ;;  %v65_v1 = vmax.f32 %v57_v52, 0.0  ;;  %v63_v2 = vmax.f32 %v55_v53, 0.0  ;;  %v67_v9 = vmax.f32 %v59_v58, 0.0 }
  0x1f   :  { %v66_v10 = vmax.f32 %v58_v59, 0.0  ;;  %v61_v11 = vadd.f32 %v493_v39, %v49_v60  ;;  %vm322_vm11 = vcmask 1041409   ;;  %vm324_vm13 = vcmask 1042434  }
  0x20   :  { %275 = vperm.xlu0 %562, %v254_v16   ;;  %v60_v12 = vadd.f32 %v493_v39, %v48_v61  ;;  %vm326_vm1 = vcmask 1043459  }
  0x21   :  { %278 = vperm.xlu1 %563, %v255_v19   ;;  %551 = vmatpush3.bf16.msra.mxu1 %v550_v30  ;;  %v69_v25 = vmax.f32 %v61_v11, 0.0 }
  0x22   :  { %552 = vmatprep.subr.bf16.mxu1 %v565_v21  ;;  %v68_v0 = vmax.f32 %v60_v12, 0.0 }
  0x25   :  { %554 = vmatpush3.bf16.msra.mxu1 %v553_v33 }
  0x26   :  { %555 = vmatprep.subr.bf16.mxu1 %v565_v21 }
  0x83   :  { %v94_v56 = vpop.permute.xlu1 %93  ;;  %v88_v57 = vpop.permute.xlu0 %87 }
  0x84   :  { %vm112_vm3 = vcmp.eq.s32.totalorder %v94_v56, 1  ;;  %vm110_vm4 = vcmp.eq.s32.totalorder %v88_v57, 1 }
  0x85   :  { %v120_v62 = vsel %vm112_vm3, %v64_v50, -1e+30  ;;  %v118_v63 = vsel %vm110_vm4, %v62_v51, -1e+30  ;;  %vm328_vm3 = vcmask 1044484  }
  0x86   :  { %v141_v3 = vsel %vm126_vm2, %v120_v62, -inf  ;;  %v127_v4 = vsel %vm126_vm2, %v118_v63, -inf }
  0x87   :  { %v142_v5 = vrot.slane %v141_v3, 4  ;;  %v128_v6 = vrot.slane %v127_v4, 4  ;;  %v97_v7 = vpop.permute.xlu1 %96  ;;  %v91_v8 = vpop.permute.xlu0 %90 }
  0x88   :  { %vm113_vm5 = vcmp.eq.s32.totalorder %v97_v7, 1  ;;  %vm111_vm6 = vcmp.eq.s32.totalorder %v91_v8, 1 }
  0x89   :  { %v143_v13 = vmax.f32 %v141_v3, %v142_v5  ;;  %v129_v14 = vmax.f32 %v127_v4, %v128_v6  ;;  %v121_v15 = vsel %vm113_vm5, %v65_v1, -1e+30  ;;  %v119_v16 = vsel %vm111_vm6, %v63_v2, -1e+30 }
  0x8a   :  { %v148_v17 = vsel %vm126_vm2, %v121_v15, -inf  ;;  %v134_v18 = vsel %vm126_vm2, %v119_v16, -inf  ;;  %vm330_vm6 = vcmask 1045509  }
  0x8b   :  { %v144_v19 = vrot.slane %v143_v13, 2  ;;  %v130_v20 = vrot.slane %v129_v14, 2  ;;  %v149_v21 = vrot.slane %v148_v17, 4  ;;  %v135_v22 = vrot.slane %v134_v18, 4  ;;  %v103_v23 = vpop.permute.xlu1 %102  ;;  %v100_v24 = vpop.permute.xlu0 %99 }
  0x8c   :  { %vm115_vm7 = vcmp.eq.s32.totalorder %v103_v23, 1  ;;  %vm114_vm8 = vcmp.eq.s32.totalorder %v100_v24, 1 }
  0x8d   :  { %v150_v26 = vmax.f32 %v148_v17, %v149_v21  ;;  %v136_v27 = vmax.f32 %v134_v18, %v135_v22  ;;  %v123_v28 = vsel %vm115_vm7, %v67_v9, -1e+30  ;;  %v122_v29 = vsel %vm114_vm8, %v66_v10, -1e+30 }
  0x8e   :  { %v162_v30 = vsel %vm126_vm2, %v123_v28, -inf  ;;  %v155_v31 = vsel %vm126_vm2, %v122_v29, -inf  ;;  %v131_v32 = vmax.f32 %v129_v14, %v130_v20  ;;  %v145_v33 = vmax.f32 %v143_v13, %v144_v19 }
  0x8f   :  { %v151_v34 = vrot.slane %v150_v26, 2  ;;  %v137_v35 = vrot.slane %v136_v27, 2  ;;  %v163_v36 = vrot.slane %v162_v30, 4  ;;  %v156_v37 = vrot.slane %v155_v31, 4  ;;  %v109_v38 = vpop.permute.xlu1 %108  ;;  %v106_v39 = vpop.permute.xlu0 %105 }
  0x90   :  { %vm117_vm9 = vcmp.eq.s32.totalorder %v109_v38, 1  ;;  %vm116_vm10 = vcmp.eq.s32.totalorder %v106_v39, 1  ;;  %v132_v40 = vrot.slane %v131_v32, 1  ;;  %v146_v41 = vrot.slane %v145_v33, 1 }
  0x91   :  { %v164_v42 = vmax.f32 %v162_v30, %v163_v36  ;;  %v157_v43 = vmax.f32 %v155_v31, %v156_v37  ;;  %v125_v44 = vsel %vm117_vm9, %v69_v25, -1e+30  ;;  %v124_v45 = vsel %vm116_vm10, %v68_v0, -1e+30  ;;  %v308_v36 = vld [vmem:[%s736_s4 + $0x38] sm:$0xff] }
  0x92   :  { %v176_v46 = vsel %vm126_vm2, %v125_v44, -inf  ;;  %v169_v47 = vsel %vm126_vm2, %v124_v45, -inf  ;;  %v138_v48 = vmax.f32 %v136_v27, %v137_v35  ;;  %v152_v56 = vmax.f32 %v150_v26, %v151_v34  ;;  %v307_v35 = vld [vmem:[%s736_s4 + $0x30] sm:$0xff] }
  0x93   :  { %v165_v49 = vrot.slane %v164_v42, 2  ;;  %v158_v50 = vrot.slane %v157_v43, 2  ;;  %v177_v51 = vrot.slane %v176_v46, 4  ;;  %v170_v52 = vrot.slane %v169_v47, 4  ;;  %v258_v53 = vpop.permute.xlu0 %257 }
  0x94   :  { %v261_v54 = vpop.permute.xlu1 %260  ;;  %v139_v55 = vrot.slane %v138_v48, 1  ;;  %vm280_vm12 = vcmp.eq.s32.totalorder %v258_v53, 1  ;;  %v133_v59 = vmax.f32 %v131_v32, %v132_v40  ;;  %v147_v60 = vmax.f32 %v145_v33, %v146_v41  ;;  %v300_v41 = vld [vmem:[%s735_s3 + $0x20] sm:$0xff] }
  0x95   :  { %v178_v57 = vmax.f32 %v176_v46, %v177_v51  ;;  %v171_v58 = vmax.f32 %v169_v47, %v170_v52  ;;  %v153_v62 = vrot.slane %v152_v56, 1  ;;  %v166_v63 = vmax.f32 %v164_v42, %v165_v49  ;;  %v309_v47 = vld [vmem:[%s736_s4 + $0x40] sm:$0xff] }
  0x96   :  { %v140_v61 = vmax.f32 %v138_v48, %v139_v55  ;;  %v159_v1 = vmax.f32 %v157_v43, %v158_v50  ;;  %vm281_vm14 = vcmp.eq.s32.totalorder %v261_v54, 1  ;;  %v288_v4 = vsel %vm280_vm12, %v133_v59, 0.0 }
  0x97   :  { %v179_v2 = vrot.slane %v178_v57, 2  ;;  %v172_v3 = vrot.slane %v171_v58, 2  ;;  %v264_v5 = vpop.permute.xlu0 %263  ;;  %v154_v8 = vmax.f32 %v152_v56, %v153_v62  ;;  %v167_v9 = vrot.slane %v166_v63, 1 }
  0x98   :  { %v289_v6 = vsel %vm281_vm14, %v140_v61, 0.0  ;;  %v267_v7 = vpop.permute.xlu1 %266  ;;  %vm282_vm15 = vcmp.eq.s32.totalorder %v264_v5, 1  ;;  %v160_v12 = vrot.slane %v159_v1, 1  ;;  %vm332_vm7 = vcmask 1046534  }
  0x99   :  { %v323_v10 = vsel %vm322_vm11, %v289_v6, %v288_v4  ;;  %vm283_vm0 = vcmp.eq.s32.totalorder %v267_v7, 1  ;;  %v290_v11 = vsel %vm282_vm15, %v147_v60, 0.0  ;;  %v180_v15 = vmax.f32 %v178_v57, %v179_v2 }
  0x9a   :  { %v291_v13 = vsel %vm283_vm0, %v154_v8, 0.0  ;;  %v325_v14 = vsel %vm324_vm13, %v290_v11, %v323_v10  ;;  %v161_v17 = vmax.f32 %v159_v1, %v160_v12  ;;  %v173_v18 = vmax.f32 %v171_v58, %v172_v3 }
  0x9b   :  { %v270_v16 = vpop.permute.xlu0 %269  ;;  %v168_v20 = vmax.f32 %v166_v63, %v167_v9  ;;  %v181_v21 = vrot.slane %v180_v15, 1  ;;  %v327_v23 = vsel %vm326_vm1, %v291_v13, %v325_v14  ;;  %vm334_vm9 = vcmask 1047559  }
  0x9c   :  { %v273_v19 = vpop.permute.xlu1 %272  ;;  %vm284_vm4 = vcmp.eq.s32.totalorder %v270_v16, 1  ;;  %v174_v24 = vrot.slane %v173_v18, 1  ;;  %v556_v37 = vpack.c.bf16 %v308_v36, %v307_v35  ;;  %v310_v38 = vlaneseq }
  0x9d   :  { %vm285_vm5 = vcmp.eq.s32.totalorder %v273_v19, 1  ;;  %v292_v22 = vsel %vm284_vm4, %v161_v17, 0.0  ;;  %v182_v29 = vmax.f32 %v180_v15, %v181_v21 }
  0x9e   :  { %v293_v25 = vsel %vm285_vm5, %v168_v20, 0.0  ;;  %v329_v0 = vsel %vm328_vm3, %v292_v22, %v327_v23  ;;  %v175_v27 = vmax.f32 %v173_v18, %v174_v24  ;;  %557 = vmatpush3.bf16.msra.mxu1 %v556_v37  ;;  %v311_v39 = vshrl.u32 %v310_v38, 7 }
  0x9f   :  { %v276_v26 = vpop.permute.xlu0 %275  ;;  %v331_v31 = vsel %vm330_vm6, %v293_v25, %v329_v0 }
  0xa0   :  { %v279_v28 = vpop.permute.xlu1 %278  ;;  %vm286_vm8 = vcmp.eq.s32.totalorder %v276_v26, 1  ;;  %v312_v40 = vsub.s32 0, %v311_v39 }
  0xa1   :  { %vm287_vm10 = vcmp.eq.s32.totalorder %v279_v28, 1  ;;  %v294_v30 = vsel %vm286_vm8, %v175_v27, 0.0 }
  0xa2   :  { %v295_v32 = vsel %vm287_vm10, %v182_v29, 0.0  ;;  %v333_v33 = vsel %vm332_vm7, %v294_v30, %v331_v31  ;;  %v313_v42 = vrot.slane %v300_v41, %v312_v40  ;;  %v412_v48 = vrot.slane %v309_v47, %v312_v40 }
  0xa3   :  { %v335_v34 = vsel %vm334_vm9, %v295_v32, %v333_v33 }
  0xa4   :  { %519 = vmatmul.mubr.msk.f32.vlgmr.msra.gmra.mrb[0].mxu0 %vm126_vm2, %v335_v34  ;;  %vm413_vm2 = vcmask 523264  }
 0x177   :  { %v404_v43 = vpop.f32.mrb[0].mxu0 }
 0x178   :  { %v405_v44 = vadd.f32 %v404_v43, %v313_v42  ;;  %v520_v45 = vpop.f32.mrb[1].mxu0 }
 0x17a   :  { %v408_v46 = vmax.f32 %v405_v44, 0.0 }
 0x17c   :  { %538 = vmatmul.mubr.msk.f32.vlgmr.msra.gmra.mrb[0].mxu1 %vm413_vm2, %v408_v46 }
 0x24f   :  { %v483_v49 = vpop.f32.mrb[0].mxu1 }
 0x250   :  { %v484_v50 = vadd.f32 %v483_v49, %v412_v48  ;;  %v539_v51 = vpop.f32.mrb[1].mxu1 }
 0x252   :  { %487 = vst [vmem:[%s739_s5] sm:$0xff] %v484_v50 }

</bundles_post_ra>
